<compile_context>
chip_gen: v7x
topology: tpu7x:2x2x1
jax: 0.10.0
libtpu: 0.0.40
codegen_flags: <defaults>
</compile_context>

<pallas_src>
import functools

import jax
import jax.numpy as jnp
from jax import lax
from jax.experimental import pallas as pl
from jax.experimental.pallas import tpu as pltpu


def _round_up(n, m):
    return ((n + m - 1) // m) * m


def pc_rnn_kernel(x_ref, h0_ref, c0_ref, w_fused_ref, w_o_t_ref, w_o_ref,
                  w_c_ref, b_r_ref, b_o_ref, err_ref, h_scr, c_scr,
                  *, time_chunk, tau_h, alpha_x, alpha_h):
    chunk = pl.program_id(0)

    # Initialize the carried state on the first time chunk.
    @pl.when(chunk == 0)
    def _():
        h_scr[...] = h0_ref[...]
        c_scr[...] = c0_ref[...]

    B, S = h_scr.shape
    O = b_o_ref.shape[1]
    inv_tau = 1.0 / tau_h

    # Hoist weight / bias reads (and the bias broadcasts) out of the time loop.
    w_fused = w_fused_ref[...]          # (S + C, S): [w_r.T ; w_c.T]
    w_o_t = w_o_t_ref[...]              # (S, O)
    w_o = w_o_ref[...]                  # (O, S)
    w_c = w_c_ref[...]                  # (S, C)
    b_r = jnp.broadcast_to(b_r_ref[...], (B, S))
    b_o = jnp.broadcast_to(b_o_ref[...], (B, O))

    def step(t, carry):
        h, c = carry
        # Fused recurrent matmul: concat([tanh(h), c]) @ [w_r.T ; w_c.T]
        a = jnp.concatenate([jnp.tanh(h), c], axis=-1)
        rec = jnp.dot(a, w_fused, preferred_element_type=jnp.float32)
        h_prior = (1.0 - inv_tau) * h + inv_tau * (rec + b_r)

        tanh_hp = jnp.tanh(h_prior)
        x_pred = jnp.dot(tanh_hp, w_o_t,
                         preferred_element_type=jnp.float32) + b_o
        error = x_pred - x_ref[t]
        err_ref[t] = error               # VMEM store; HBM writeback once/chunk

        if alpha_x > 0:
            # delta_h == error_h == h_prior - h_post (computed directly).
            delta_h = alpha_x * (1.0 - tanh_hp * tanh_hp) * jnp.dot(
                error, w_o, preferred_element_type=jnp.float32)
            h_new = h_prior - delta_h
            c_new = c - alpha_h * jnp.dot(delta_h, w_c,
                                          preferred_element_type=jnp.float32)
        else:
            h_new = h_prior
            c_new = c
        return h_new, c_new

    h_fin, c_fin = lax.fori_loop(0, time_chunk, step,
                                 (h_scr[...], c_scr[...]),
                                 unroll=(time_chunk <= 32))
    h_scr[...] = h_fin
    c_scr[...] = c_fin


def pc_rnn_forward(x, c_init, h_init, w_o, b_o, w_r, b_r, w_c,
                   *, tau_h, alpha_x, alpha_h, time_chunk=None):
    """Returns `errors` of shape (seq_len, batch, output_dim), matching the
    PyTorch forward return value."""
    seq_len, batch, output_dim = x.shape
    states_dim = w_r.shape[0]
    causes_dim = w_c.shape[1]
    f32 = jnp.float32

    # ---- pad to hardware-friendly shapes (zeros are inert for this model) ---
    B_p = _round_up(max(batch, 1), 8)
    O_p = _round_up(output_dim, 128)
    S_p = _round_up(states_dim, 128)
    C_p = _round_up(causes_dim, 128)

    if time_chunk is None:
        time_chunk = min(seq_len, 128)
    T_p = _round_up(seq_len, time_chunk)
    n_chunks = T_p // time_chunk

    x_p = jnp.zeros((T_p, B_p, O_p), f32)
    x_p = x_p.at[:seq_len, :batch, :output_dim].set(x.astype(f32))
    h0 = jnp.zeros((B_p, S_p), f32).at[:batch, :states_dim].set(h_init.astype(f32))
    c0 = jnp.zeros((B_p, C_p), f32).at[:batch, :causes_dim].set(c_init.astype(f32))

    # Fused recurrent weight: [w_r.T ; w_c.T] -> (S_p + C_p, S_p).
    w_fused = jnp.zeros((S_p + C_p, S_p), f32)
    w_fused = w_fused.at[:states_dim, :states_dim].set(w_r.T.astype(f32))
    w_fused = w_fused.at[S_p:S_p + causes_dim, :states_dim].set(w_c.T.astype(f32))

    w_o_t = jnp.zeros((S_p, O_p), f32).at[:states_dim, :output_dim].set(w_o.T.astype(f32))
    w_o_p = jnp.zeros((O_p, S_p), f32).at[:output_dim, :states_dim].set(w_o.astype(f32))
    w_c_p = jnp.zeros((S_p, C_p), f32).at[:states_dim, :causes_dim].set(w_c.astype(f32))
    b_r_p = jnp.zeros((1, S_p), f32).at[0, :states_dim].set(b_r.astype(f32))
    b_o_p = jnp.zeros((1, O_p), f32).at[0, :output_dim].set(b_o.astype(f32))

    kernel = functools.partial(pc_rnn_kernel, time_chunk=time_chunk,
                               tau_h=tau_h, alpha_x=alpha_x, alpha_h=alpha_h)

    def _const_spec(shape):
        return pl.BlockSpec(shape, lambda i, _n=len(shape): (0,) * _n)

    errors_p = pl.pallas_call(
        kernel,
        out_shape=jax.ShapeDtypeStruct((T_p, B_p, O_p), jnp.float32),
        grid_spec=pltpu.PrefetchScalarGridSpec(
            num_scalar_prefetch=0,
            grid=(n_chunks,),
            in_specs=[
                pl.BlockSpec((time_chunk, B_p, O_p), lambda i: (i, 0, 0)),  # x chunk
                _const_spec((B_p, S_p)),            # h_init
                _const_spec((B_p, C_p)),            # c_init
                _const_spec((S_p + C_p, S_p)),      # fused [w_r.T ; w_c.T]
                _const_spec((S_p, O_p)),            # w_o.T
                _const_spec((O_p, S_p)),            # w_o
                _const_spec((S_p, C_p)),            # w_c
                _const_spec((1, S_p)),              # b_r
                _const_spec((1, O_p)),              # b_o
            ],
            out_specs=pl.BlockSpec((time_chunk, B_p, O_p), lambda i: (i, 0, 0)),
            scratch_shapes=[
                pltpu.VMEM((B_p, S_p), jnp.float32),   # carried h_post
                pltpu.VMEM((B_p, C_p), jnp.float32),   # carried c
            ],
        ),
        compiler_params=pltpu.CompilerParams(
            dimension_semantics=("arbitrary",)),  # sequential recurrence
    )(x_p, h0, c0, w_fused, w_o_t, w_o_p, w_c_p, b_r_p, b_o_p)

    return errors_p[:seq_len, :batch, :output_dim]


def pc_rnn_forward_ref(x, c_init, h_init, w_o, b_o, w_r, b_r, w_c,
                       *, tau_h, alpha_x, alpha_h):
    """Plain-JAX reference mirroring the PyTorch loop (for verification)."""
    seq_len = x.shape[0]
    errs = []
    old_h = h_init
    c = c_init
    for t in range(seq_len):
        h_prior = (1 - 1 / tau_h) * old_h + (1 / tau_h) * (
            jnp.tanh(old_h) @ w_r.T + c @ w_c.T + b_r[None, :])
        x_pred = jnp.tanh(h_prior) @ w_o.T + b_o[None, :]
        error = x_pred - x[t]
        errs.append(error)
        if alpha_x > 0:
            h_post = h_prior - alpha_x * (1 - jnp.tanh(h_prior) ** 2) * (error @ w_o)
            error_h = h_prior - h_post
            c = c - alpha_h * (error_h @ w_c)
            old_h = h_post
        else:
            old_h = h_prior
    return jnp.stack(errs, axis=0)


if __name__ == "__main__":
    # Small shapes consistent with the module's forward signature.
    seq_len, batch = 8, 2
    causes_dim, states_dim, output_dim = 8, 32, 16
    tau_h, alpha_x, alpha_h = 2.0, 0.1, 0.05

    key = jax.random.PRNGKey(0)
    k = jax.random.split(key, 8)

    # Deterministic parameter init (same scaling as the PyTorch __init__).
    w_o = jax.random.normal(k[0], (output_dim, states_dim), jnp.float32) / states_dim
    b_o = jax.random.normal(k[1], (output_dim,), jnp.float32) / 10.0
    w_r = jax.random.normal(k[2], (states_dim, states_dim), jnp.float32) / states_dim
    b_r = jax.random.normal(k[3], (states_dim,), jnp.float32) / 10.0
    w_c = jax.random.normal(k[4], (states_dim, causes_dim), jnp.float32) / causes_dim

    # Inputs.
    x = jax.random.normal(k[5], (seq_len, batch, output_dim), jnp.float32)
    c_init = jax.random.normal(k[6], (batch, causes_dim), jnp.float32)
    h_init = jnp.zeros((batch, states_dim), jnp.float32)  # PyTorch default h_init=0

    errors = pc_rnn_forward(x, c_init, h_init, w_o, b_o, w_r, b_r, w_c,
                            tau_h=tau_h, alpha_x=alpha_x, alpha_h=alpha_h)
    errors = jax.block_until_ready(errors)

    ref = pc_rnn_forward_ref(x, c_init, h_init, w_o, b_o, w_r, b_r, w_c,
                             tau_h=tau_h, alpha_x=alpha_x, alpha_h=alpha_h)
    assert errors.shape == (seq_len, batch, output_dim)
    assert jnp.allclose(errors, ref, atol=1e-4, rtol=1e-4), "mismatch vs reference"

    print("KERNEL_OK")
</pallas_src>

<mosaic_0001>
module attributes {stable_mosaic.version = 11 : i64} {
  func.func @pc_rnn_kernel(%arg0: i32, %arg1: memref<8x8x128xf32, #tpu.memory_space<vmem>>, %arg2: memref<8x128xf32, #tpu.memory_space<vmem>>, %arg3: memref<8x128xf32, #tpu.memory_space<vmem>>, %arg4: memref<256x128xf32, #tpu.memory_space<vmem>>, %arg5: memref<128x128xf32, #tpu.memory_space<vmem>>, %arg6: memref<128x128xf32, #tpu.memory_space<vmem>>, %arg7: memref<128x128xf32, #tpu.memory_space<vmem>>, %arg8: memref<1x128xf32, #tpu.memory_space<vmem>>, %arg9: memref<1x128xf32, #tpu.memory_space<vmem>>, %arg10: memref<8x8x128xf32, #tpu.memory_space<vmem>>, %arg11: memref<8x128xf32, #tpu.memory_space<vmem>>, %arg12: memref<8x128xf32, #tpu.memory_space<vmem>>) attributes {dimension_semantics = [#tpu.dimension_semantics<arbitrary>], iteration_bounds = array<i64: 1>, scalar_prefetch = 0 : i64, scratch_operands = 2 : i64, tpu.core_type = #tpu.core_type<tc>, window_params = [{transform_indices = @transform_0, window_bounds = array<i64: 8, 8, 128>}, {pipeline_mode = #tpu.pipeline_mode<synchronous>, transform_indices = @transform_1, window_bounds = array<i64: 8, 128>}, {pipeline_mode = #tpu.pipeline_mode<synchronous>, transform_indices = @transform_2, window_bounds = array<i64: 8, 128>}, {pipeline_mode = #tpu.pipeline_mode<synchronous>, transform_indices = @transform_3, window_bounds = array<i64: 256, 128>}, {pipeline_mode = #tpu.pipeline_mode<synchronous>, transform_indices = @transform_4, window_bounds = array<i64: 128, 128>}, {pipeline_mode = #tpu.pipeline_mode<synchronous>, transform_indices = @transform_5, window_bounds = array<i64: 128, 128>}, {pipeline_mode = #tpu.pipeline_mode<synchronous>, transform_indices = @transform_6, window_bounds = array<i64: 128, 128>}, {pipeline_mode = #tpu.pipeline_mode<synchronous>, transform_indices = @transform_7, window_bounds = array<i64: 1, 128>}, {pipeline_mode = #tpu.pipeline_mode<synchronous>, transform_indices = @transform_8, window_bounds = array<i64: 1, 128>}, {transform_indices = @transform_9, window_bounds = array<i64: 8, 8, 128>}]} {
    %c0_i32 = arith.constant 0 : i32
    %0 = arith.cmpi eq, %arg0, %c0_i32 : i32
    %1 = arith.extui %0 : i1 to i32
    %c0_i32_0 = arith.constant 0 : i32
    %2 = arith.cmpi ne, %1, %c0_i32_0 : i32
    scf.if %2 {
      %c0_124 = arith.constant 0 : index
      %c0_125 = arith.constant 0 : index
      %273 = vector.load %arg2[%c0_124, %c0_125] : memref<8x128xf32, #tpu.memory_space<vmem>>, vector<8x128xf32>
      %c0_126 = arith.constant 0 : index
      %c0_127 = arith.constant 0 : index
      %274 = vector.load %arg11[%c0_126, %c0_127] : memref<8x128xf32, #tpu.memory_space<vmem>>, vector<8x128xf32>
      tpu.vector_store %arg11[%c0_126, %c0_127], %273 {strides = array<i32>} : memref<8x128xf32, #tpu.memory_space<vmem>>, vector<8x128xf32>,
      %c0_128 = arith.constant 0 : index
      %c0_129 = arith.constant 0 : index
      %275 = vector.load %arg3[%c0_128, %c0_129] : memref<8x128xf32, #tpu.memory_space<vmem>>, vector<8x128xf32>
      %c0_130 = arith.constant 0 : index
      %c0_131 = arith.constant 0 : index
      %276 = vector.load %arg12[%c0_130, %c0_131] : memref<8x128xf32, #tpu.memory_space<vmem>>, vector<8x128xf32>
      tpu.vector_store %arg12[%c0_130, %c0_131], %275 {strides = array<i32>} : memref<8x128xf32, #tpu.memory_space<vmem>>, vector<8x128xf32>,
    } else {
    }
    %c0 = arith.constant 0 : index
    %c0_1 = arith.constant 0 : index
    %3 = vector.load %arg4[%c0, %c0_1] : memref<256x128xf32, #tpu.memory_space<vmem>>, vector<256x128xf32>
    %c0_2 = arith.constant 0 : index
    %c0_3 = arith.constant 0 : index
    %4 = vector.load %arg5[%c0_2, %c0_3] : memref<128x128xf32, #tpu.memory_space<vmem>>, vector<128x128xf32>
    %c0_4 = arith.constant 0 : index
    %c0_5 = arith.constant 0 : index
    %5 = vector.load %arg6[%c0_4, %c0_5] : memref<128x128xf32, #tpu.memory_space<vmem>>, vector<128x128xf32>
    %c0_6 = arith.constant 0 : index
    %c0_7 = arith.constant 0 : index
    %6 = vector.load %arg7[%c0_6, %c0_7] : memref<128x128xf32, #tpu.memory_space<vmem>>, vector<128x128xf32>
    %c0_8 = arith.constant 0 : index
    %c0_9 = arith.constant 0 : index
    %7 = vector.load %arg8[%c0_8, %c0_9] : memref<1x128xf32, #tpu.memory_space<vmem>>, vector<1x128xf32>
    %8 = vector.shape_cast %7 : vector<1x128xf32> to vector<1x128xf32>
    %9 = vector.broadcast %8 : vector<1x128xf32> to vector<8x128xf32>
    %c0_10 = arith.constant 0 : index
    %c0_11 = arith.constant 0 : index
    %10 = vector.load %arg9[%c0_10, %c0_11] : memref<1x128xf32, #tpu.memory_space<vmem>>, vector<1x128xf32>
    %11 = vector.shape_cast %10 : vector<1x128xf32> to vector<1x128xf32>
    %12 = vector.broadcast %11 : vector<1x128xf32> to vector<8x128xf32>
    %c0_12 = arith.constant 0 : index
    %c0_13 = arith.constant 0 : index
    %13 = vector.load %arg11[%c0_12, %c0_13] : memref<8x128xf32, #tpu.memory_space<vmem>>, vector<8x128xf32>
    %c0_14 = arith.constant 0 : index
    %c0_15 = arith.constant 0 : index
    %14 = vector.load %arg12[%c0_14, %c0_15] : memref<8x128xf32, #tpu.memory_space<vmem>>, vector<8x128xf32>
    %c0_i32_16 = arith.constant 0 : i32
    %15 = math.tanh %13 : vector<8x128xf32>
    %16 = tpu.concatenate %15, %14 in 1 : vector<8x128xf32>, vector<8x128xf32> -> vector<8x256xf32>
    %cst = arith.constant dense<0.000000e+00> : vector<8x128xf32>
    %17 = tpu.matmul %16, %3, %cst {dimension_numbers = #tpu.dot_dimension_numbers<[1], [0], [0], [1], [0, 0, 1, 1], [], []>} : vector<8x256xf32>, vector<256x128xf32>, vector<8x128xf32> -> vector<8x128xf32>
    %cst_17 = arith.constant 5.000000e-01 : f32
    %18 = vector.broadcast %cst_17 : f32 to vector<8x128xf32>
    %19 = arith.mulf %18, %13 : vector<8x128xf32>
    %20 = arith.addf %17, %9 : vector<8x128xf32>
    %cst_18 = arith.constant 5.000000e-01 : f32
    %21 = vector.broadcast %cst_18 : f32 to vector<8x128xf32>
    %22 = arith.mulf %21, %20 : vector<8x128xf32>
    %23 = arith.addf %19, %22 : vector<8x128xf32>
    %24 = math.tanh %23 : vector<8x128xf32>
    %cst_19 = arith.constant dense<0.000000e+00> : vector<8x128xf32>
    %25 = tpu.matmul %24, %4, %cst_19 {dimension_numbers = #tpu.dot_dimension_numbers<[1], [0], [0], [1], [0, 0, 1, 1], [], []>} : vector<8x128xf32>, vector<128x128xf32>, vector<8x128xf32> -> vector<8x128xf32>
    %26 = arith.addf %25, %12 : vector<8x128xf32>
    %27 = arith.index_cast %c0_i32_16 : i32 to index
    %c0_20 = arith.constant 0 : index
    %c0_21 = arith.constant 0 : index
    %28 = vector.load %arg1[%27, %c0_20, %c0_21] : memref<8x8x128xf32, #tpu.memory_space<vmem>>, vector<1x8x128xf32>
    %29 = vector.shape_cast %28 : vector<1x8x128xf32> to vector<8x128xf32>
    %30 = arith.subf %26, %29 : vector<8x128xf32>
    %31 = arith.index_cast %c0_i32_16 : i32 to index
    %c0_22 = arith.constant 0 : index
    %c0_23 = arith.constant 0 : index
    %32 = vector.load %arg10[%31, %c0_22, %c0_23] : memref<8x8x128xf32, #tpu.memory_space<vmem>>, vector<1x8x128xf32>
    %33 = vector.shape_cast %32 : vector<1x8x128xf32> to vector<8x128xf32>
    %34 = vector.shape_cast %30 : vector<8x128xf32> to vector<1x8x128xf32>
    tpu.vector_store %arg10[%31, %c0_22, %c0_23], %34 {strides = array<i32>} : memref<8x8x128xf32, #tpu.memory_space<vmem>>, vector<1x8x128xf32>,
    %35 = arith.mulf %24, %24 : vector<8x128xf32>
    %cst_24 = arith.constant 1.000000e+00 : f32
    %36 = vector.broadcast %cst_24 : f32 to vector<8x128xf32>
    %37 = arith.subf %36, %35 : vector<8x128xf32>
    %cst_25 = arith.constant 1.000000e-01 : f32
    %38 = vector.broadcast %cst_25 : f32 to vector<8x128xf32>
    %39 = arith.mulf %38, %37 : vector<8x128xf32>
    %cst_26 = arith.constant dense<0.000000e+00> : vector<8x128xf32>
    %40 = tpu.matmul %30, %5, %cst_26 {dimension_numbers = #tpu.dot_dimension_numbers<[1], [0], [0], [1], [0, 0, 1, 1], [], []>} : vector<8x128xf32>, vector<128x128xf32>, vector<8x128xf32> -> vector<8x128xf32>
    %41 = arith.mulf %39, %40 : vector<8x128xf32>
    %42 = arith.subf %23, %41 : vector<8x128xf32>
    %cst_27 = arith.constant dense<0.000000e+00> : vector<8x128xf32>
    %43 = tpu.matmul %41, %6, %cst_27 {dimension_numbers = #tpu.dot_dimension_numbers<[1], [0], [0], [1], [0, 0, 1, 1], [], []>} : vector<8x128xf32>, vector<128x128xf32>, vector<8x128xf32> -> vector<8x128xf32>
    %cst_28 = arith.constant 5.000000e-02 : f32
    %44 = vector.broadcast %cst_28 : f32 to vector<8x128xf32>
    %45 = arith.mulf %44, %43 : vector<8x128xf32>
    %46 = arith.subf %14, %45 : vector<8x128xf32>
    %c1_i32 = arith.constant 1 : i32
    %47 = math.tanh %42 : vector<8x128xf32>
    %48 = tpu.concatenate %47, %46 in 1 : vector<8x128xf32>, vector<8x128xf32> -> vector<8x256xf32>
    %cst_29 = arith.constant dense<0.000000e+00> : vector<8x128xf32>
    %49 = tpu.matmul %48, %3, %cst_29 {dimension_numbers = #tpu.dot_dimension_numbers<[1], [0], [0], [1], [0, 0, 1, 1], [], []>} : vector<8x256xf32>, vector<256x128xf32>, vector<8x128xf32> -> vector<8x128xf32>
    %cst_30 = arith.constant 5.000000e-01 : f32
    %50 = vector.broadcast %cst_30 : f32 to vector<8x128xf32>
    %51 = arith.mulf %50, %42 : vector<8x128xf32>
    %52 = arith.addf %49, %9 : vector<8x128xf32>
    %cst_31 = arith.constant 5.000000e-01 : f32
    %53 = vector.broadcast %cst_31 : f32 to vector<8x128xf32>
    %54 = arith.mulf %53, %52 : vector<8x128xf32>
    %55 = arith.addf %51, %54 : vector<8x128xf32>
    %56 = math.tanh %55 : vector<8x128xf32>
    %cst_32 = arith.constant dense<0.000000e+00> : vector<8x128xf32>
    %57 = tpu.matmul %56, %4, %cst_32 {dimension_numbers = #tpu.dot_dimension_numbers<[1], [0], [0], [1], [0, 0, 1, 1], [], []>} : vector<8x128xf32>, vector<128x128xf32>, vector<8x128xf32> -> vector<8x128xf32>
    %58 = arith.addf %57, %12 : vector<8x128xf32>
    %59 = arith.index_cast %c1_i32 : i32 to index
    %c0_33 = arith.constant 0 : index
    %c0_34 = arith.constant 0 : index
    %60 = vector.load %arg1[%59, %c0_33, %c0_34] : memref<8x8x128xf32, #tpu.memory_space<vmem>>, vector<1x8x128xf32>
    %61 = vector.shape_cast %60 : vector<1x8x128xf32> to vector<8x128xf32>
    %62 = arith.subf %58, %61 : vector<8x128xf32>
    %63 = arith.index_cast %c1_i32 : i32 to index
    %c0_35 = arith.constant 0 : index
    %c0_36 = arith.constant 0 : index
    %64 = vector.load %arg10[%63, %c0_35, %c0_36] : memref<8x8x128xf32, #tpu.memory_space<vmem>>, vector<1x8x128xf32>
    %65 = vector.shape_cast %64 : vector<1x8x128xf32> to vector<8x128xf32>
    %66 = vector.shape_cast %62 : vector<8x128xf32> to vector<1x8x128xf32>
    tpu.vector_store %arg10[%63, %c0_35, %c0_36], %66 {strides = array<i32>} : memref<8x8x128xf32, #tpu.memory_space<vmem>>, vector<1x8x128xf32>,
    %67 = arith.mulf %56, %56 : vector<8x128xf32>
    %cst_37 = arith.constant 1.000000e+00 : f32
    %68 = vector.broadcast %cst_37 : f32 to vector<8x128xf32>
    %69 = arith.subf %68, %67 : vector<8x128xf32>
    %cst_38 = arith.constant 1.000000e-01 : f32
    %70 = vector.broadcast %cst_38 : f32 to vector<8x128xf32>
    %71 = arith.mulf %70, %69 : vector<8x128xf32>
    %cst_39 = arith.constant dense<0.000000e+00> : vector<8x128xf32>
    %72 = tpu.matmul %62, %5, %cst_39 {dimension_numbers = #tpu.dot_dimension_numbers<[1], [0], [0], [1], [0, 0, 1, 1], [], []>} : vector<8x128xf32>, vector<128x128xf32>, vector<8x128xf32> -> vector<8x128xf32>
    %73 = arith.mulf %71, %72 : vector<8x128xf32>
    %74 = arith.subf %55, %73 : vector<8x128xf32>
    %cst_40 = arith.constant dense<0.000000e+00> : vector<8x128xf32>
    %75 = tpu.matmul %73, %6, %cst_40 {dimension_numbers = #tpu.dot_dimension_numbers<[1], [0], [0], [1], [0, 0, 1, 1], [], []>} : vector<8x128xf32>, vector<128x128xf32>, vector<8x128xf32> -> vector<8x128xf32>
    %cst_41 = arith.constant 5.000000e-02 : f32
    %76 = vector.broadcast %cst_41 : f32 to vector<8x128xf32>
    %77 = arith.mulf %76, %75 : vector<8x128xf32>
    %78 = arith.subf %46, %77 : vector<8x128xf32>
    %c2_i32 = arith.constant 2 : i32
    %79 = math.tanh %74 : vector<8x128xf32>
    %80 = tpu.concatenate %79, %78 in 1 : vector<8x128xf32>, vector<8x128xf32> -> vector<8x256xf32>
    %cst_42 = arith.constant dense<0.000000e+00> : vector<8x128xf32>
    %81 = tpu.matmul %80, %3, %cst_42 {dimension_numbers = #tpu.dot_dimension_numbers<[1], [0], [0], [1], [0, 0, 1, 1], [], []>} : vector<8x256xf32>, vector<256x128xf32>, vector<8x128xf32> -> vector<8x128xf32>
    %cst_43 = arith.constant 5.000000e-01 : f32
    %82 = vector.broadcast %cst_43 : f32 to vector<8x128xf32>
    %83 = arith.mulf %82, %74 : vector<8x128xf32>
    %84 = arith.addf %81, %9 : vector<8x128xf32>
    %cst_44 = arith.constant 5.000000e-01 : f32
    %85 = vector.broadcast %cst_44 : f32 to vector<8x128xf32>
    %86 = arith.mulf %85, %84 : vector<8x128xf32>
    %87 = arith.addf %83, %86 : vector<8x128xf32>
    %88 = math.tanh %87 : vector<8x128xf32>
    %cst_45 = arith.constant dense<0.000000e+00> : vector<8x128xf32>
    %89 = tpu.matmul %88, %4, %cst_45 {dimension_numbers = #tpu.dot_dimension_numbers<[1], [0], [0], [1], [0, 0, 1, 1], [], []>} : vector<8x128xf32>, vector<128x128xf32>, vector<8x128xf32> -> vector<8x128xf32>
    %90 = arith.addf %89, %12 : vector<8x128xf32>
    %91 = arith.index_cast %c2_i32 : i32 to index
    %c0_46 = arith.constant 0 : index
    %c0_47 = arith.constant 0 : index
    %92 = vector.load %arg1[%91, %c0_46, %c0_47] : memref<8x8x128xf32, #tpu.memory_space<vmem>>, vector<1x8x128xf32>
    %93 = vector.shape_cast %92 : vector<1x8x128xf32> to vector<8x128xf32>
    %94 = arith.subf %90, %93 : vector<8x128xf32>
    %95 = arith.index_cast %c2_i32 : i32 to index
    %c0_48 = arith.constant 0 : index
    %c0_49 = arith.constant 0 : index
    %96 = vector.load %arg10[%95, %c0_48, %c0_49] : memref<8x8x128xf32, #tpu.memory_space<vmem>>, vector<1x8x128xf32>
    %97 = vector.shape_cast %96 : vector<1x8x128xf32> to vector<8x128xf32>
    %98 = vector.shape_cast %94 : vector<8x128xf32> to vector<1x8x128xf32>
    tpu.vector_store %arg10[%95, %c0_48, %c0_49], %98 {strides = array<i32>} : memref<8x8x128xf32, #tpu.memory_space<vmem>>, vector<1x8x128xf32>,
    %99 = arith.mulf %88, %88 : vector<8x128xf32>
    %cst_50 = arith.constant 1.000000e+00 : f32
    %100 = vector.broadcast %cst_50 : f32 to vector<8x128xf32>
    %101 = arith.subf %100, %99 : vector<8x128xf32>
    %cst_51 = arith.constant 1.000000e-01 : f32
    %102 = vector.broadcast %cst_51 : f32 to vector<8x128xf32>
    %103 = arith.mulf %102, %101 : vector<8x128xf32>
    %cst_52 = arith.constant dense<0.000000e+00> : vector<8x128xf32>
    %104 = tpu.matmul %94, %5, %cst_52 {dimension_numbers = #tpu.dot_dimension_numbers<[1], [0], [0], [1], [0, 0, 1, 1], [], []>} : vector<8x128xf32>, vector<128x128xf32>, vector<8x128xf32> -> vector<8x128xf32>
    %105 = arith.mulf %103, %104 : vector<8x128xf32>
    %106 = arith.subf %87, %105 : vector<8x128xf32>
    %cst_53 = arith.constant dense<0.000000e+00> : vector<8x128xf32>
    %107 = tpu.matmul %105, %6, %cst_53 {dimension_numbers = #tpu.dot_dimension_numbers<[1], [0], [0], [1], [0, 0, 1, 1], [], []>} : vector<8x128xf32>, vector<128x128xf32>, vector<8x128xf32> -> vector<8x128xf32>
    %cst_54 = arith.constant 5.000000e-02 : f32
    %108 = vector.broadcast %cst_54 : f32 to vector<8x128xf32>
    %109 = arith.mulf %108, %107 : vector<8x128xf32>
    %110 = arith.subf %78, %109 : vector<8x128xf32>
    %c3_i32 = arith.constant 3 : i32
    %111 = math.tanh %106 : vector<8x128xf32>
    %112 = tpu.concatenate %111, %110 in 1 : vector<8x128xf32>, vector<8x128xf32> -> vector<8x256xf32>
    %cst_55 = arith.constant dense<0.000000e+00> : vector<8x128xf32>
    %113 = tpu.matmul %112, %3, %cst_55 {dimension_numbers = #tpu.dot_dimension_numbers<[1], [0], [0], [1], [0, 0, 1, 1], [], []>} : vector<8x256xf32>, vector<256x128xf32>, vector<8x128xf32> -> vector<8x128xf32>
    %cst_56 = arith.constant 5.000000e-01 : f32
    %114 = vector.broadcast %cst_56 : f32 to vector<8x128xf32>
    %115 = arith.mulf %114, %106 : vector<8x128xf32>
    %116 = arith.addf %113, %9 : vector<8x128xf32>
    %cst_57 = arith.constant 5.000000e-01 : f32
    %117 = vector.broadcast %cst_57 : f32 to vector<8x128xf32>
    %118 = arith.mulf %117, %116 : vector<8x128xf32>
    %119 = arith.addf %115, %118 : vector<8x128xf32>
    %120 = math.tanh %119 : vector<8x128xf32>
    %cst_58 = arith.constant dense<0.000000e+00> : vector<8x128xf32>
    %121 = tpu.matmul %120, %4, %cst_58 {dimension_numbers = #tpu.dot_dimension_numbers<[1], [0], [0], [1], [0, 0, 1, 1], [], []>} : vector<8x128xf32>, vector<128x128xf32>, vector<8x128xf32> -> vector<8x128xf32>
    %122 = arith.addf %121, %12 : vector<8x128xf32>
    %123 = arith.index_cast %c3_i32 : i32 to index
    %c0_59 = arith.constant 0 : index
    %c0_60 = arith.constant 0 : index
    %124 = vector.load %arg1[%123, %c0_59, %c0_60] : memref<8x8x128xf32, #tpu.memory_space<vmem>>, vector<1x8x128xf32>
    %125 = vector.shape_cast %124 : vector<1x8x128xf32> to vector<8x128xf32>
    %126 = arith.subf %122, %125 : vector<8x128xf32>
    %127 = arith.index_cast %c3_i32 : i32 to index
    %c0_61 = arith.constant 0 : index
    %c0_62 = arith.constant 0 : index
    %128 = vector.load %arg10[%127, %c0_61, %c0_62] : memref<8x8x128xf32, #tpu.memory_space<vmem>>, vector<1x8x128xf32>
    %129 = vector.shape_cast %128 : vector<1x8x128xf32> to vector<8x128xf32>
    %130 = vector.shape_cast %126 : vector<8x128xf32> to vector<1x8x128xf32>
    tpu.vector_store %arg10[%127, %c0_61, %c0_62], %130 {strides = array<i32>} : memref<8x8x128xf32, #tpu.memory_space<vmem>>, vector<1x8x128xf32>,
    %131 = arith.mulf %120, %120 : vector<8x128xf32>
    %cst_63 = arith.constant 1.000000e+00 : f32
    %132 = vector.broadcast %cst_63 : f32 to vector<8x128xf32>
    %133 = arith.subf %132, %131 : vector<8x128xf32>
    %cst_64 = arith.constant 1.000000e-01 : f32
    %134 = vector.broadcast %cst_64 : f32 to vector<8x128xf32>
    %135 = arith.mulf %134, %133 : vector<8x128xf32>
    %cst_65 = arith.constant dense<0.000000e+00> : vector<8x128xf32>
    %136 = tpu.matmul %126, %5, %cst_65 {dimension_numbers = #tpu.dot_dimension_numbers<[1], [0], [0], [1], [0, 0, 1, 1], [], []>} : vector<8x128xf32>, vector<128x128xf32>, vector<8x128xf32> -> vector<8x128xf32>
    %137 = arith.mulf %135, %136 : vector<8x128xf32>
    %138 = arith.subf %119, %137 : vector<8x128xf32>
    %cst_66 = arith.constant dense<0.000000e+00> : vector<8x128xf32>
    %139 = tpu.matmul %137, %6, %cst_66 {dimension_numbers = #tpu.dot_dimension_numbers<[1], [0], [0], [1], [0, 0, 1, 1], [], []>} : vector<8x128xf32>, vector<128x128xf32>, vector<8x128xf32> -> vector<8x128xf32>
    %cst_67 = arith.constant 5.000000e-02 : f32
    %140 = vector.broadcast %cst_67 : f32 to vector<8x128xf32>
    %141 = arith.mulf %140, %139 : vector<8x128xf32>
    %142 = arith.subf %110, %141 : vector<8x128xf32>
    %c4_i32 = arith.constant 4 : i32
    %143 = math.tanh %138 : vector<8x128xf32>
    %144 = tpu.concatenate %143, %142 in 1 : vector<8x128xf32>, vector<8x128xf32> -> vector<8x256xf32>
    %cst_68 = arith.constant dense<0.000000e+00> : vector<8x128xf32>
    %145 = tpu.matmul %144, %3, %cst_68 {dimension_numbers = #tpu.dot_dimension_numbers<[1], [0], [0], [1], [0, 0, 1, 1], [], []>} : vector<8x256xf32>, vector<256x128xf32>, vector<8x128xf32> -> vector<8x128xf32>
    %cst_69 = arith.constant 5.000000e-01 : f32
    %146 = vector.broadcast %cst_69 : f32 to vector<8x128xf32>
    %147 = arith.mulf %146, %138 : vector<8x128xf32>
    %148 = arith.addf %145, %9 : vector<8x128xf32>
    %cst_70 = arith.constant 5.000000e-01 : f32
    %149 = vector.broadcast %cst_70 : f32 to vector<8x128xf32>
    %150 = arith.mulf %149, %148 : vector<8x128xf32>
    %151 = arith.addf %147, %150 : vector<8x128xf32>
    %152 = math.tanh %151 : vector<8x128xf32>
    %cst_71 = arith.constant dense<0.000000e+00> : vector<8x128xf32>
    %153 = tpu.matmul %152, %4, %cst_71 {dimension_numbers = #tpu.dot_dimension_numbers<[1], [0], [0], [1], [0, 0, 1, 1], [], []>} : vector<8x128xf32>, vector<128x128xf32>, vector<8x128xf32> -> vector<8x128xf32>
    %154 = arith.addf %153, %12 : vector<8x128xf32>
    %155 = arith.index_cast %c4_i32 : i32 to index
    %c0_72 = arith.constant 0 : index
    %c0_73 = arith.constant 0 : index
    %156 = vector.load %arg1[%155, %c0_72, %c0_73] : memref<8x8x128xf32, #tpu.memory_space<vmem>>, vector<1x8x128xf32>
    %157 = vector.shape_cast %156 : vector<1x8x128xf32> to vector<8x128xf32>
    %158 = arith.subf %154, %157 : vector<8x128xf32>
    %159 = arith.index_cast %c4_i32 : i32 to index
    %c0_74 = arith.constant 0 : index
    %c0_75 = arith.constant 0 : index
    %160 = vector.load %arg10[%159, %c0_74, %c0_75] : memref<8x8x128xf32, #tpu.memory_space<vmem>>, vector<1x8x128xf32>
    %161 = vector.shape_cast %160 : vector<1x8x128xf32> to vector<8x128xf32>
    %162 = vector.shape_cast %158 : vector<8x128xf32> to vector<1x8x128xf32>
    tpu.vector_store %arg10[%159, %c0_74, %c0_75], %162 {strides = array<i32>} : memref<8x8x128xf32, #tpu.memory_space<vmem>>, vector<1x8x128xf32>,
    %163 = arith.mulf %152, %152 : vector<8x128xf32>
    %cst_76 = arith.constant 1.000000e+00 : f32
    %164 = vector.broadcast %cst_76 : f32 to vector<8x128xf32>
    %165 = arith.subf %164, %163 : vector<8x128xf32>
    %cst_77 = arith.constant 1.000000e-01 : f32
    %166 = vector.broadcast %cst_77 : f32 to vector<8x128xf32>
    %167 = arith.mulf %166, %165 : vector<8x128xf32>
    %cst_78 = arith.constant dense<0.000000e+00> : vector<8x128xf32>
    %168 = tpu.matmul %158, %5, %cst_78 {dimension_numbers = #tpu.dot_dimension_numbers<[1], [0], [0], [1], [0, 0, 1, 1], [], []>} : vector<8x128xf32>, vector<128x128xf32>, vector<8x128xf32> -> vector<8x128xf32>
    %169 = arith.mulf %167, %168 : vector<8x128xf32>
    %170 = arith.subf %151, %169 : vector<8x128xf32>
    %cst_79 = arith.constant dense<0.000000e+00> : vector<8x128xf32>
    %171 = tpu.matmul %169, %6, %cst_79 {dimension_numbers = #tpu.dot_dimension_numbers<[1], [0], [0], [1], [0, 0, 1, 1], [], []>} : vector<8x128xf32>, vector<128x128xf32>, vector<8x128xf32> -> vector<8x128xf32>
    %cst_80 = arith.constant 5.000000e-02 : f32
    %172 = vector.broadcast %cst_80 : f32 to vector<8x128xf32>
    %173 = arith.mulf %172, %171 : vector<8x128xf32>
    %174 = arith.subf %142, %173 : vector<8x128xf32>
    %c5_i32 = arith.constant 5 : i32
    %175 = math.tanh %170 : vector<8x128xf32>
    %176 = tpu.concatenate %175, %174 in 1 : vector<8x128xf32>, vector<8x128xf32> -> vector<8x256xf32>
    %cst_81 = arith.constant dense<0.000000e+00> : vector<8x128xf32>
    %177 = tpu.matmul %176, %3, %cst_81 {dimension_numbers = #tpu.dot_dimension_numbers<[1], [0], [0], [1], [0, 0, 1, 1], [], []>} : vector<8x256xf32>, vector<256x128xf32>, vector<8x128xf32> -> vector<8x128xf32>
    %cst_82 = arith.constant 5.000000e-01 : f32
    %178 = vector.broadcast %cst_82 : f32 to vector<8x128xf32>
    %179 = arith.mulf %178, %170 : vector<8x128xf32>
    %180 = arith.addf %177, %9 : vector<8x128xf32>
    %cst_83 = arith.constant 5.000000e-01 : f32
    %181 = vector.broadcast %cst_83 : f32 to vector<8x128xf32>
    %182 = arith.mulf %181, %180 : vector<8x128xf32>
    %183 = arith.addf %179, %182 : vector<8x128xf32>
    %184 = math.tanh %183 : vector<8x128xf32>
    %cst_84 = arith.constant dense<0.000000e+00> : vector<8x128xf32>
    %185 = tpu.matmul %184, %4, %cst_84 {dimension_numbers = #tpu.dot_dimension_numbers<[1], [0], [0], [1], [0, 0, 1, 1], [], []>} : vector<8x128xf32>, vector<128x128xf32>, vector<8x128xf32> -> vector<8x128xf32>
    %186 = arith.addf %185, %12 : vector<8x128xf32>
    %187 = arith.index_cast %c5_i32 : i32 to index
    %c0_85 = arith.constant 0 : index
    %c0_86 = arith.constant 0 : index
    %188 = vector.load %arg1[%187, %c0_85, %c0_86] : memref<8x8x128xf32, #tpu.memory_space<vmem>>, vector<1x8x128xf32>
    %189 = vector.shape_cast %188 : vector<1x8x128xf32> to vector<8x128xf32>
    %190 = arith.subf %186, %189 : vector<8x128xf32>
    %191 = arith.index_cast %c5_i32 : i32 to index
    %c0_87 = arith.constant 0 : index
    %c0_88 = arith.constant 0 : index
    %192 = vector.load %arg10[%191, %c0_87, %c0_88] : memref<8x8x128xf32, #tpu.memory_space<vmem>>, vector<1x8x128xf32>
    %193 = vector.shape_cast %192 : vector<1x8x128xf32> to vector<8x128xf32>
    %194 = vector.shape_cast %190 : vector<8x128xf32> to vector<1x8x128xf32>
    tpu.vector_store %arg10[%191, %c0_87, %c0_88], %194 {strides = array<i32>} : memref<8x8x128xf32, #tpu.memory_space<vmem>>, vector<1x8x128xf32>,
    %195 = arith.mulf %184, %184 : vector<8x128xf32>
    %cst_89 = arith.constant 1.000000e+00 : f32
    %196 = vector.broadcast %cst_89 : f32 to vector<8x128xf32>
    %197 = arith.subf %196, %195 : vector<8x128xf32>
    %cst_90 = arith.constant 1.000000e-01 : f32
    %198 = vector.broadcast %cst_90 : f32 to vector<8x128xf32>
    %199 = arith.mulf %198, %197 : vector<8x128xf32>
    %cst_91 = arith.constant dense<0.000000e+00> : vector<8x128xf32>
    %200 = tpu.matmul %190, %5, %cst_91 {dimension_numbers = #tpu.dot_dimension_numbers<[1], [0], [0], [1], [0, 0, 1, 1], [], []>} : vector<8x128xf32>, vector<128x128xf32>, vector<8x128xf32> -> vector<8x128xf32>
    %201 = arith.mulf %199, %200 : vector<8x128xf32>
    %202 = arith.subf %183, %201 : vector<8x128xf32>
    %cst_92 = arith.constant dense<0.000000e+00> : vector<8x128xf32>
    %203 = tpu.matmul %201, %6, %cst_92 {dimension_numbers = #tpu.dot_dimension_numbers<[1], [0], [0], [1], [0, 0, 1, 1], [], []>} : vector<8x128xf32>, vector<128x128xf32>, vector<8x128xf32> -> vector<8x128xf32>
    %cst_93 = arith.constant 5.000000e-02 : f32
    %204 = vector.broadcast %cst_93 : f32 to vector<8x128xf32>
    %205 = arith.mulf %204, %203 : vector<8x128xf32>
    %206 = arith.subf %174, %205 : vector<8x128xf32>
    %c6_i32 = arith.constant 6 : i32
    %207 = math.tanh %202 : vector<8x128xf32>
    %208 = tpu.concatenate %207, %206 in 1 : vector<8x128xf32>, vector<8x128xf32> -> vector<8x256xf32>
    %cst_94 = arith.constant dense<0.000000e+00> : vector<8x128xf32>
    %209 = tpu.matmul %208, %3, %cst_94 {dimension_numbers = #tpu.dot_dimension_numbers<[1], [0], [0], [1], [0, 0, 1, 1], [], []>} : vector<8x256xf32>, vector<256x128xf32>, vector<8x128xf32> -> vector<8x128xf32>
    %cst_95 = arith.constant 5.000000e-01 : f32
    %210 = vector.broadcast %cst_95 : f32 to vector<8x128xf32>
    %211 = arith.mulf %210, %202 : vector<8x128xf32>
    %212 = arith.addf %209, %9 : vector<8x128xf32>
    %cst_96 = arith.constant 5.000000e-01 : f32
    %213 = vector.broadcast %cst_96 : f32 to vector<8x128xf32>
    %214 = arith.mulf %213, %212 : vector<8x128xf32>
    %215 = arith.addf %211, %214 : vector<8x128xf32>
    %216 = math.tanh %215 : vector<8x128xf32>
    %cst_97 = arith.constant dense<0.000000e+00> : vector<8x128xf32>
    %217 = tpu.matmul %216, %4, %cst_97 {dimension_numbers = #tpu.dot_dimension_numbers<[1], [0], [0], [1], [0, 0, 1, 1], [], []>} : vector<8x128xf32>, vector<128x128xf32>, vector<8x128xf32> -> vector<8x128xf32>
    %218 = arith.addf %217, %12 : vector<8x128xf32>
    %219 = arith.index_cast %c6_i32 : i32 to index
    %c0_98 = arith.constant 0 : index
    %c0_99 = arith.constant 0 : index
    %220 = vector.load %arg1[%219, %c0_98, %c0_99] : memref<8x8x128xf32, #tpu.memory_space<vmem>>, vector<1x8x128xf32>
    %221 = vector.shape_cast %220 : vector<1x8x128xf32> to vector<8x128xf32>
    %222 = arith.subf %218, %221 : vector<8x128xf32>
    %223 = arith.index_cast %c6_i32 : i32 to index
    %c0_100 = arith.constant 0 : index
    %c0_101 = arith.constant 0 : index
    %224 = vector.load %arg10[%223, %c0_100, %c0_101] : memref<8x8x128xf32, #tpu.memory_space<vmem>>, vector<1x8x128xf32>
    %225 = vector.shape_cast %224 : vector<1x8x128xf32> to vector<8x128xf32>
    %226 = vector.shape_cast %222 : vector<8x128xf32> to vector<1x8x128xf32>
    tpu.vector_store %arg10[%223, %c0_100, %c0_101], %226 {strides = array<i32>} : memref<8x8x128xf32, #tpu.memory_space<vmem>>, vector<1x8x128xf32>,
    %227 = arith.mulf %216, %216 : vector<8x128xf32>
    %cst_102 = arith.constant 1.000000e+00 : f32
    %228 = vector.broadcast %cst_102 : f32 to vector<8x128xf32>
    %229 = arith.subf %228, %227 : vector<8x128xf32>
    %cst_103 = arith.constant 1.000000e-01 : f32
    %230 = vector.broadcast %cst_103 : f32 to vector<8x128xf32>
    %231 = arith.mulf %230, %229 : vector<8x128xf32>
    %cst_104 = arith.constant dense<0.000000e+00> : vector<8x128xf32>
    %232 = tpu.matmul %222, %5, %cst_104 {dimension_numbers = #tpu.dot_dimension_numbers<[1], [0], [0], [1], [0, 0, 1, 1], [], []>} : vector<8x128xf32>, vector<128x128xf32>, vector<8x128xf32> -> vector<8x128xf32>
    %233 = arith.mulf %231, %232 : vector<8x128xf32>
    %234 = arith.subf %215, %233 : vector<8x128xf32>
    %cst_105 = arith.constant dense<0.000000e+00> : vector<8x128xf32>
    %235 = tpu.matmul %233, %6, %cst_105 {dimension_numbers = #tpu.dot_dimension_numbers<[1], [0], [0], [1], [0, 0, 1, 1], [], []>} : vector<8x128xf32>, vector<128x128xf32>, vector<8x128xf32> -> vector<8x128xf32>
    %cst_106 = arith.constant 5.000000e-02 : f32
    %236 = vector.broadcast %cst_106 : f32 to vector<8x128xf32>
    %237 = arith.mulf %236, %235 : vector<8x128xf32>
    %238 = arith.subf %206, %237 : vector<8x128xf32>
    %c7_i32 = arith.constant 7 : i32
    %239 = math.tanh %234 : vector<8x128xf32>
    %240 = tpu.concatenate %239, %238 in 1 : vector<8x128xf32>, vector<8x128xf32> -> vector<8x256xf32>
    %cst_107 = arith.constant dense<0.000000e+00> : vector<8x128xf32>
    %241 = tpu.matmul %240, %3, %cst_107 {dimension_numbers = #tpu.dot_dimension_numbers<[1], [0], [0], [1], [0, 0, 1, 1], [], []>} : vector<8x256xf32>, vector<256x128xf32>, vector<8x128xf32> -> vector<8x128xf32>
    %cst_108 = arith.constant 5.000000e-01 : f32
    %242 = vector.broadcast %cst_108 : f32 to vector<8x128xf32>
    %243 = arith.mulf %242, %234 : vector<8x128xf32>
    %244 = arith.addf %241, %9 : vector<8x128xf32>
    %cst_109 = arith.constant 5.000000e-01 : f32
    %245 = vector.broadcast %cst_109 : f32 to vector<8x128xf32>
    %246 = arith.mulf %245, %244 : vector<8x128xf32>
    %247 = arith.addf %243, %246 : vector<8x128xf32>
    %248 = math.tanh %247 : vector<8x128xf32>
    %cst_110 = arith.constant dense<0.000000e+00> : vector<8x128xf32>
    %249 = tpu.matmul %248, %4, %cst_110 {dimension_numbers = #tpu.dot_dimension_numbers<[1], [0], [0], [1], [0, 0, 1, 1], [], []>} : vector<8x128xf32>, vector<128x128xf32>, vector<8x128xf32> -> vector<8x128xf32>
    %250 = arith.addf %249, %12 : vector<8x128xf32>
    %251 = arith.index_cast %c7_i32 : i32 to index
    %c0_111 = arith.constant 0 : index
    %c0_112 = arith.constant 0 : index
    %252 = vector.load %arg1[%251, %c0_111, %c0_112] : memref<8x8x128xf32, #tpu.memory_space<vmem>>, vector<1x8x128xf32>
    %253 = vector.shape_cast %252 : vector<1x8x128xf32> to vector<8x128xf32>
    %254 = arith.subf %250, %253 : vector<8x128xf32>
    %255 = arith.index_cast %c7_i32 : i32 to index
    %c0_113 = arith.constant 0 : index
    %c0_114 = arith.constant 0 : index
    %256 = vector.load %arg10[%255, %c0_113, %c0_114] : memref<8x8x128xf32, #tpu.memory_space<vmem>>, vector<1x8x128xf32>
    %257 = vector.shape_cast %256 : vector<1x8x128xf32> to vector<8x128xf32>
    %258 = vector.shape_cast %254 : vector<8x128xf32> to vector<1x8x128xf32>
    tpu.vector_store %arg10[%255, %c0_113, %c0_114], %258 {strides = array<i32>} : memref<8x8x128xf32, #tpu.memory_space<vmem>>, vector<1x8x128xf32>,
    %259 = arith.mulf %248, %248 : vector<8x128xf32>
    %cst_115 = arith.constant 1.000000e+00 : f32
    %260 = vector.broadcast %cst_115 : f32 to vector<8x128xf32>
    %261 = arith.subf %260, %259 : vector<8x128xf32>
    %cst_116 = arith.constant 1.000000e-01 : f32
    %262 = vector.broadcast %cst_116 : f32 to vector<8x128xf32>
    %263 = arith.mulf %262, %261 : vector<8x128xf32>
    %cst_117 = arith.constant dense<0.000000e+00> : vector<8x128xf32>
    %264 = tpu.matmul %254, %5, %cst_117 {dimension_numbers = #tpu.dot_dimension_numbers<[1], [0], [0], [1], [0, 0, 1, 1], [], []>} : vector<8x128xf32>, vector<128x128xf32>, vector<8x128xf32> -> vector<8x128xf32>
    %265 = arith.mulf %263, %264 : vector<8x128xf32>
    %266 = arith.subf %247, %265 : vector<8x128xf32>
    %cst_118 = arith.constant dense<0.000000e+00> : vector<8x128xf32>
    %267 = tpu.matmul %265, %6, %cst_118 {dimension_numbers = #tpu.dot_dimension_numbers<[1], [0], [0], [1], [0, 0, 1, 1], [], []>} : vector<8x128xf32>, vector<128x128xf32>, vector<8x128xf32> -> vector<8x128xf32>
    %cst_119 = arith.constant 5.000000e-02 : f32
    %268 = vector.broadcast %cst_119 : f32 to vector<8x128xf32>
    %269 = arith.mulf %268, %267 : vector<8x128xf32>
    %270 = arith.subf %238, %269 : vector<8x128xf32>
    %c8_i32 = arith.constant 8 : i32
    %c0_120 = arith.constant 0 : index
    %c0_121 = arith.constant 0 : index
    %271 = vector.load %arg11[%c0_120, %c0_121] : memref<8x128xf32, #tpu.memory_space<vmem>>, vector<8x128xf32>
    tpu.vector_store %arg11[%c0_120, %c0_121], %266 {strides = array<i32>} : memref<8x128xf32, #tpu.memory_space<vmem>>, vector<8x128xf32>,
    %c0_122 = arith.constant 0 : index
    %c0_123 = arith.constant 0 : index
    %272 = vector.load %arg12[%c0_122, %c0_123] : memref<8x128xf32, #tpu.memory_space<vmem>>, vector<8x128xf32>
    tpu.vector_store %arg12[%c0_122, %c0_123], %270 {strides = array<i32>} : memref<8x128xf32, #tpu.memory_space<vmem>>, vector<8x128xf32>,
    return
  }
  func.func @transform_0(%arg0: i32) -> (i32, i32, i32) {
    %c0_i32 = arith.constant 0 : i32
    %c0_i32_0 = arith.constant 0 : i32
    %c0_i32_1 = arith.constant 0 : i32
    return %arg0, %c0_i32, %c0_i32_0 : i32, i32, i32
  }
  func.func @transform_1(%arg0: i32) -> (i32, i32) {
    %c0_i32 = arith.constant 0 : i32
    %c0_i32_0 = arith.constant 0 : i32
    %c0_i32_1 = arith.constant 0 : i32
    return %c0_i32, %c0_i32_0 : i32, i32
  }
  func.func @transform_2(%arg0: i32) -> (i32, i32) {
    %c0_i32 = arith.constant 0 : i32
    %c0_i32_0 = arith.constant 0 : i32
    %c0_i32_1 = arith.constant 0 : i32
    return %c0_i32, %c0_i32_0 : i32, i32
  }
  func.func @transform_3(%arg0: i32) -> (i32, i32) {
    %c0_i32 = arith.constant 0 : i32
    %c0_i32_0 = arith.constant 0 : i32
    %c0_i32_1 = arith.constant 0 : i32
    return %c0_i32, %c0_i32_0 : i32, i32
  }
  func.func @transform_4(%arg0: i32) -> (i32, i32) {
    %c0_i32 = arith.constant 0 : i32
    %c0_i32_0 = arith.constant 0 : i32
    %c0_i32_1 = arith.constant 0 : i32
    return %c0_i32, %c0_i32_0 : i32, i32
  }
  func.func @transform_5(%arg0: i32) -> (i32, i32) {
    %c0_i32 = arith.constant 0 : i32
    %c0_i32_0 = arith.constant 0 : i32
    %c0_i32_1 = arith.constant 0 : i32
    return %c0_i32, %c0_i32_0 : i32, i32
  }
  func.func @transform_6(%arg0: i32) -> (i32, i32) {
    %c0_i32 = arith.constant 0 : i32
    %c0_i32_0 = arith.constant 0 : i32
    %c0_i32_1 = arith.constant 0 : i32
    return %c0_i32, %c0_i32_0 : i32, i32
  }
  func.func @transform_7(%arg0: i32) -> (i32, i32) {
    %c0_i32 = arith.constant 0 : i32
    %c0_i32_0 = arith.constant 0 : i32
    %c0_i32_1 = arith.constant 0 : i32
    return %c0_i32, %c0_i32_0 : i32, i32
  }
  func.func @transform_8(%arg0: i32) -> (i32, i32) {
    %c0_i32 = arith.constant 0 : i32
    %c0_i32_0 = arith.constant 0 : i32
    %c0_i32_1 = arith.constant 0 : i32
    return %c0_i32, %c0_i32_0 : i32, i32
  }
  func.func @transform_9(%arg0: i32) -> (i32, i32, i32) {
    %c0_i32 = arith.constant 0 : i32
    %c0_i32_0 = arith.constant 0 : i32
    %c0_i32_1 = arith.constant 0 : i32
    return %arg0, %c0_i32, %c0_i32_0 : i32, i32, i32
  }
}

</mosaic_0001>

<bundles_post_ra>
// kernel: tpu_custom_call.1
= control target key start
LH: loop header
LB: loop body
LE: loop exit
PB: predicated region body
PF: predicated region fallthrough
CT: control target
= control target key end

     0   :  { %14 = vsyncpa [#allocation5], 0  ;;  %s6137_s0 = inlined_call_operand.hbm [shape: f32[8,8,128], index: 0, kind: input, shape index: {}]   ;;  %s6138_s1 = inlined_call_operand.hbm [shape: f32[8,128], index: 1, kind: input, shape index: {}]   ;;  %s6139_s2 = inlined_call_operand.hbm [shape: f32[8,128], index: 2, kind: input, shape index: {}]   ;;  %s6140_s3 = inlined_call_operand.hbm [shape: f32[256,128], index: 3, kind: input, shape index: {}]   ;;  %s6141_s4 = inlined_call_operand.hbm [shape: f32[128,128], index: 4, kind: input, shape index: {}]   ;;  %s6142_s5 = inlined_call_operand.hbm [shape: f32[128,128], index: 5, kind: input, shape index: {}]   ;;  %s6143_s6 = inlined_call_operand.hbm [shape: f32[128,128], index: 6, kind: input, shape index: {}]   ;;  %s6144_s7 = inlined_call_operand.vmem [shape: f32[1,128], index: 7, kind: input, shape index: {}]   ;;  %s6145_s8 = inlined_call_operand.vmem [shape: f32[1,128], index: 8, kind: input, shape index: {}]   ;;  %s6146_s9 = inlined_call_operand.hbm [shape: f32[8,8,128], index: 9, kind: output, shape index: {}]  }
   0x1   :  { %15 = vsyncpa [#allocation8], 0 }
   0x2   :  { %16 = vsyncpa [#allocation11], 0 }
   0x3   :  { %17 = vsyncpa [#allocation14], 0 }
   0x4   :  { %18 = vsyncpa [#allocation6], 0  ;;  %s5219_s30 = smov [#allocation7]   ;;  %s5033_s13 = scalar_lea.hbm %s6138_s1, 128 }
   0x5   :  { %s37_s10 = sshll.u32 %s5219_s30, 4  ;;  %p5034_p0 = scmp.ne.s32.totalorder %s6138_s1, %s5033_s13  ;;  %s38_s10 = int_to_ptr.vmem [resolvable:$true] %s37_s10 }
   0x6   :  { %p5037_p1 = scmp.lt.u32.totalorder %s5033_s13, %s6138_s1 }
   0x8   :  { %p5039_p2 = pnand %p5037_p1, %p5034_p0 }
   0xa   :  { %5042 = shalt.err (!%p5039_p2)
}
   0xb   :  { %s5043_s18 = scalar_lea.vmem %s38_s10, 128  ;;  %p5048_p4 = scmp.lt.s32.totalorder %s38_s10, %s38_s10 }
   0xc   :  { %p5044_p3 = scmp.ne.s32.totalorder %s38_s10, %s5043_s18  ;;  %p5049_p5 = scmp.lt.s32.totalorder %s5043_s18, %s5043_s18 }
   0xe   :  { %p5050_p6 = por %p5049_p5, %p5048_p4 }
  0x10   :  { %p5051_p7 = pnand %p5050_p6, %p5044_p3 }
  0x12   :  { %5054 = shalt.err (!%p5051_p7)
}
  0x13   :  { %40 = dma.hbm_to_vmem [thread:$0]  %s6138_s1, 128, %s38_s10, [#allocation8]  }
  0x14   :  { %s5220_s21 = smov [#allocation10]   ;;  %s5221_s23 = smov [#allocation13]  }
  0x15   :  { %s56_s22 = sshll.u32 %s5220_s21, 4  ;;  %s80_s24 = sshll.u32 %s5221_s23, 4  ;;  %s57_s22 = int_to_ptr.vmem [resolvable:$true] %s56_s22  ;;  %s81_s24 = int_to_ptr.vmem [resolvable:$true] %s80_s24 }
  0x16   :  { %s5055_s27 = scalar_lea.hbm %s6140_s3, 4096 }
  0x17   :  { %p5056_p8 = scmp.ne.s32.totalorder %s6140_s3, %s5055_s27  ;;  %p5059_p9 = scmp.lt.u32.totalorder %s5055_s27, %s6140_s3 }
  0x19   :  { %p5061_p10 = pnand %p5059_p9, %p5056_p8 }
  0x1b   :  { %5064 = shalt.err (!%p5061_p10)
}
  0x1c   :  { %s5065_s1 = scalar_lea.vmem %s57_s22, 4096  ;;  %p5070_p12 = scmp.lt.s32.totalorder %s57_s22, %s57_s22 }
  0x1d   :  { %p5066_p11 = scmp.ne.s32.totalorder %s57_s22, %s5065_s1  ;;  %p5071_p13 = scmp.lt.s32.totalorder %s5065_s1, %s5065_s1 }
  0x1f   :  { %p5072_p0 = por %p5071_p13, %p5070_p12 }
  0x21   :  { %p5073_p1 = pnand %p5072_p0, %p5066_p11 }
  0x23   :  { %5076 = shalt.err (!%p5073_p1)
}
  0x24   :  { %s5222_s10 = smov 128   ;;  %s5223_s12 = smov 8  }
  0x25   :  { %62 = dma.hbm_to_vmem [thread:$0]  %s6140_s3, 4096, %s57_s22, [#allocation11], %s5222_s10, %s5222_s10, %s5223_s12  }
  0x26   :  { %s5077_s17 = scalar_lea.hbm %s6142_s5, 2048 }
  0x27   :  { %p5078_p2 = scmp.ne.s32.totalorder %s6142_s5, %s5077_s17  ;;  %p5081_p3 = scmp.lt.u32.totalorder %s5077_s17, %s6142_s5 }
  0x29   :  { %p5083_p4 = pnand %p5081_p3, %p5078_p2 }
  0x2b   :  { %5086 = shalt.err (!%p5083_p4)
}
  0x2c   :  { %s5087_s23 = scalar_lea.vmem %s81_s24, 2048  ;;  %p5092_p6 = scmp.lt.s32.totalorder %s81_s24, %s81_s24 }
  0x2d   :  { %p5088_p5 = scmp.ne.s32.totalorder %s81_s24, %s5087_s23  ;;  %p5093_p7 = scmp.lt.s32.totalorder %s5087_s23, %s5087_s23 }
  0x2f   :  { %p5094_p8 = por %p5093_p7, %p5092_p6 }
  0x31   :  { %p5095_p9 = pnand %p5094_p8, %p5088_p5 }
  0x33   :  { %5098 = shalt.err (!%p5095_p9)
}
  0x34   :  { %86 = dma.hbm_to_vmem [thread:$0]  %s6142_s5, 2048, %s81_s24, [#allocation14], %s5222_s10, %s5222_s10, %s5223_s12  }
  0x35   :  { %s5224_s25 = smov [#allocation4]   ;;  %s5225_s27 = smov [#allocation9]  }
  0x36   :  { %s24_s26 = sshll.u32 %s5224_s25, 4  ;;  %s47_s28 = sshll.u32 %s5225_s27, 4  ;;  %s25_s26 = int_to_ptr.vmem [resolvable:$true] %s24_s26  ;;  %s48_s28 = int_to_ptr.vmem [resolvable:$true] %s47_s28 }
  0x37   :  { %s5099_s11 = scalar_lea.hbm %s6137_s0, 1024 }
  0x38   :  { %p5100_p10 = scmp.ne.s32.totalorder %s6137_s0, %s5099_s11  ;;  %p5103_p11 = scmp.lt.u32.totalorder %s5099_s11, %s6137_s0 }
  0x3a   :  { %p5105_p12 = pnand %p5103_p11, %p5100_p10 }
  0x3c   :  { %5108 = shalt.err (!%p5105_p12)
}
  0x3d   :  { %s5109_s5 = scalar_lea.vmem %s25_s26, 1024  ;;  %p5114_p0 = scmp.lt.s32.totalorder %s25_s26, %s25_s26 }
  0x3e   :  { %p5110_p13 = scmp.ne.s32.totalorder %s25_s26, %s5109_s5  ;;  %p5115_p1 = scmp.lt.s32.totalorder %s5109_s5, %s5109_s5 }
  0x40   :  { %p5116_p2 = por %p5115_p1, %p5114_p0 }
  0x42   :  { %p5117_p3 = pnand %p5116_p2, %p5110_p13 }
  0x44   :  { %5120 = shalt.err (!%p5117_p3)
}
  0x45   :  { %30 = dma.hbm_to_vmem [thread:$0]  %s6137_s0, 1024, %s25_s26, [#allocation5], %s5222_s10, %s5222_s10, %s5223_s12  }
  0x46   :  { %s5121_s19 = scalar_lea.hbm %s6139_s2, 128 }
  0x47   :  { %p5122_p4 = scmp.ne.s32.totalorder %s6139_s2, %s5121_s19  ;;  %p5125_p5 = scmp.lt.u32.totalorder %s5121_s19, %s6139_s2 }
  0x49   :  { %p5127_p6 = pnand %p5125_p5, %p5122_p4 }
  0x4b   :  { %5130 = shalt.err (!%p5127_p6)
}
  0x4c   :  { %s5131_s22 = scalar_lea.vmem %s48_s28, 128  ;;  %p5136_p8 = scmp.lt.s32.totalorder %s48_s28, %s48_s28 }
  0x4d   :  { %p5132_p7 = scmp.ne.s32.totalorder %s48_s28, %s5131_s22  ;;  %p5137_p9 = scmp.lt.s32.totalorder %s5131_s22, %s5131_s22 }
  0x4f   :  { %p5138_p10 = por %p5137_p9, %p5136_p8 }
  0x51   :  { %p5139_p11 = pnand %p5138_p10, %p5132_p7 }
  0x53   :  { %5142 = shalt.err (!%p5139_p11)
}
  0x54   :  { %50 = dma.hbm_to_vmem [thread:$0]  %s6139_s2, 128, %s48_s28, [#allocation8]  }
  0x55   :  { %s5226_s26 = smov [#allocation12]   ;;  %s5227_s29 = smov [#allocation15]  }
  0x56   :  { %s68_s27 = sshll.u32 %s5226_s26, 4  ;;  %s92_s30 = sshll.u32 %s5227_s29, 4  ;;  %s69_s27 = int_to_ptr.vmem [resolvable:$true] %s68_s27  ;;  %s93_s30 = int_to_ptr.vmem [resolvable:$true] %s92_s30 }
  0x57   :  { %s5143_s13 = scalar_lea.hbm %s6141_s4, 2048 }
  0x58   :  { %p5144_p12 = scmp.ne.s32.totalorder %s6141_s4, %s5143_s13  ;;  %p5147_p13 = scmp.lt.u32.totalorder %s5143_s13, %s6141_s4 }
  0x5a   :  { %p5149_p0 = pnand %p5147_p13, %p5144_p12 }
  0x5c   :  { %5152 = shalt.err (!%p5149_p0)
}
  0x5d   :  { %s5153_s2 = scalar_lea.vmem %s69_s27, 2048  ;;  %p5158_p2 = scmp.lt.s32.totalorder %s69_s27, %s69_s27 }
  0x5e   :  { %p5154_p1 = scmp.ne.s32.totalorder %s69_s27, %s5153_s2  ;;  %p5159_p3 = scmp.lt.s32.totalorder %s5153_s2, %s5153_s2 }
  0x60   :  { %p5160_p4 = por %p5159_p3, %p5158_p2 }
  0x62   :  { %p5161_p5 = pnand %p5160_p4, %p5154_p1 }
  0x64   :  { %5164 = shalt.err (!%p5161_p5)
}
  0x65   :  { %74 = dma.hbm_to_vmem [thread:$0]  %s6141_s4, 2048, %s69_s27, [#allocation11], %s5222_s10, %s5222_s10, %s5223_s12  }
  0x66   :  { %s5165_s19 = scalar_lea.hbm %s6143_s6, 2048 }
  0x67   :  { %p5166_p6 = scmp.ne.s32.totalorder %s6143_s6, %s5165_s19  ;;  %p5169_p7 = scmp.lt.u32.totalorder %s5165_s19, %s6143_s6 }
  0x69   :  { %p5171_p8 = pnand %p5169_p7, %p5166_p6 }
  0x6b   :  { %5174 = shalt.err (!%p5171_p8)
}
  0x6c   :  { %s5175_s22 = scalar_lea.vmem %s93_s30, 2048  ;;  %p5180_p10 = scmp.lt.s32.totalorder %s93_s30, %s93_s30 }
  0x6d   :  { %p5176_p9 = scmp.ne.s32.totalorder %s93_s30, %s5175_s22  ;;  %p5181_p11 = scmp.lt.s32.totalorder %s5175_s22, %s5175_s22 }
  0x6f   :  { %p5182_p12 = por %p5181_p11, %p5180_p10 }
  0x71   :  { %p5183_p13 = pnand %p5182_p12, %p5176_p9 }
  0x73   :  { %5186 = shalt.err (!%p5183_p13)
}
  0x74   :  { %98 = dma.hbm_to_vmem [thread:$0]  %s6143_s6, 2048, %s93_s30, [#allocation14], %s5222_s10, %s5222_s10, %s5223_s12  }
  0x75   :  { %5209 = dma.done.wait [#allocation5], 1024  }
  0x76   :  { %5210 = vsyncadd [#allocation5], 4294966272 }
  0x77   :  { %5211 = dma.done.wait [#allocation8], 256  }
  0x78   :  { %5212 = vsyncadd [#allocation8], 4294967040 }
  0x79   :  { %5213 = dma.done.wait [#allocation11], 6144  }
  0x7a   :  { %5214 = vsyncadd [#allocation11], 4294961152 }
  0x7b   :  { %5215 = dma.done.wait [#allocation14], 4096  }
  0x7c   :  { %5216 = vsyncadd [#allocation14], 4294963200  ;;  %v5228_v0 = vmov 0.0|0.0   ;;  %v148_v1 = vld [vmem:[#allocation10 + $0x80] sm:$0xff]  ;;  %v149_v2 = vld [vmem:[#allocation10 + $0x88] sm:$0xff]  ;;  %vm5229_vm0 = vmmov 0  }
  0x7d   :  { %4186 = vmatprep.subr.bf16.mxu1 %v5228_v0  ;;  %v132_v3 = vld [vmem:[#allocation10] sm:$0xff]  ;;  %v5382_v4 = vpack.c.bf16 %v149_v2, %v148_v1  ;;  %v133_v5 = vld [vmem:[#allocation10 + $0x8] sm:$0xff]  ;;  %v150_v6 = vld [vmem:[#allocation10 + $0x90] sm:$0xff] }
  0x7e   :  { %v151_v7 = vld [vmem:[#allocation10 + $0x98] sm:$0xff]  ;;  %v5384_v8 = vpack.c.bf16 %v133_v5, %v132_v3  ;;  %v134_v10 = vld [vmem:[#allocation10 + $0x10] sm:$0xff]  ;;  %v152_v12 = vld [vmem:[#allocation10 + $0xa0] sm:$0xff] }
  0x7f   :  { %v5386_v9 = vpack.c.bf16 %v151_v7, %v150_v6  ;;  %v135_v11 = vld [vmem:[#allocation10 + $0x18] sm:$0xff]  ;;  %4155 = vmatprep.subr.bf16.mxu0 %v5382_v4  ;;  %v153_v13 = vld [vmem:[#allocation10 + $0xa8] sm:$0xff]  ;;  %v136_v16 = vld [vmem:[#allocation10 + $0x20] sm:$0xff] }
  0x80   :  { %4157 = vmatpush3.bf16.msra.mxu0 %v5384_v8  ;;  %v5390_v14 = vpack.c.bf16 %v135_v11, %v134_v10  ;;  %v5393_v15 = vpack.c.bf16 %v153_v13, %v152_v12  ;;  %v137_v17 = vld [vmem:[#allocation10 + $0x28] sm:$0xff]  ;;  %v154_v18 = vld [vmem:[#allocation10 + $0xb0] sm:$0xff]  ;;  %v155_v19 = vld [vmem:[#allocation10 + $0xb8] sm:$0xff] }
  0x81   :  { %4159 = vmatprep.subr.bf16.mxu0 %v5386_v9  ;;  %v5396_v20 = vpack.c.bf16 %v137_v17, %v136_v16  ;;  %v5399_v21 = vpack.c.bf16 %v155_v19, %v154_v18  ;;  %v138_v22 = vld [vmem:[#allocation10 + $0x30] sm:$0xff]  ;;  %v139_v23 = vld [vmem:[#allocation10 + $0x38] sm:$0xff]  ;;  %v156_v24 = vld [vmem:[#allocation10 + $0xc0] sm:$0xff]  ;;  %v5230_v17 = vmov 0.0  }
  0x82   :  { %v157_v25 = vld [vmem:[#allocation10 + $0xc8] sm:$0xff]  ;;  %v5401_v26 = vld [vmem:[#allocation9] sm:$0xff]  ;;  %v164_v27 = vld [vmem:[#allocation12] sm:$0xff]  ;;  %v5405_v29 = vpack.c.bf16 %v139_v23, %v138_v22  ;;  %3346 = vmatprep.mubr.msk.f32.mxu1 %vm5229_vm0, %v5230_v17 }
  0x83   :  { %294 = vmatprep.mubr.f32.mxu0 %v5401_v26  ;;  %v165_v28 = vld [vmem:[#allocation12 + $0x8] sm:$0xff]  ;;  %v166_v31 = vld [vmem:[#allocation12 + $0x10] sm:$0xff]  ;;  %v167_v32 = vld [vmem:[#allocation12 + $0x18] sm:$0xff]  ;;  %v5410_v33 = vpack.c.bf16 %v157_v25, %v156_v24 }
  0x84   :  { %4161 = vmatpush3.bf16.msra.mxu0 %v5390_v14  ;;  %v5407_v30 = vpack.c.bf16 %v165_v28, %v164_v27  ;;  %v140_v34 = vld [vmem:[#allocation10 + $0x40] sm:$0xff]  ;;  %v141_v35 = vld [vmem:[#allocation10 + $0x48] sm:$0xff]  ;;  %v158_v36 = vld [vmem:[#allocation10 + $0xd0] sm:$0xff]  ;;  %v5413_v38 = vpack.c.bf16 %v167_v32, %v166_v31 }
  0x85   :  { %4163 = vmatprep.subr.bf16.mxu0 %v5393_v15  ;;  %v159_v37 = vld [vmem:[#allocation10 + $0xd8] sm:$0xff]  ;;  %v168_v39 = vld [vmem:[#allocation12 + $0x20] sm:$0xff]  ;;  %v169_v40 = vld [vmem:[#allocation12 + $0x28] sm:$0xff]  ;;  %v5417_v41 = vpack.c.bf16 %v141_v35, %v140_v34 }
  0x86   :  { %4188 = vmatpush3.bf16.msra.mxu1 %v5407_v30  ;;  %v5420_v42 = vpack.c.bf16 %v159_v37, %v158_v36  ;;  %v142_v43 = vld [vmem:[#allocation10 + $0x50] sm:$0xff]  ;;  %v143_v44 = vld [vmem:[#allocation10 + $0x58] sm:$0xff]  ;;  %v160_v45 = vld [vmem:[#allocation10 + $0xe0] sm:$0xff]  ;;  %v5423_v47 = vpack.c.bf16 %v169_v40, %v168_v39 }
  0x87   :  { %4189 = vmatprep.subr.bf16.mxu1 %v5228_v0  ;;  %v161_v46 = vld [vmem:[#allocation10 + $0xe8] sm:$0xff]  ;;  %v5425_v48 = vld [vmem:[#allocation7] sm:$0xff]  ;;  %v5429_v49 = vpack.c.bf16 %v143_v44, %v142_v43  ;;  %v144_v51 = vld [vmem:[#allocation10 + $0x60] sm:$0xff] }
  0x88   :  { %4165 = vmatpush3.bf16.msra.mxu0 %v5396_v20  ;;  %v5432_v50 = vpack.c.bf16 %v161_v46, %v160_v45  ;;  %v145_v52 = vld [vmem:[#allocation10 + $0x68] sm:$0xff]  ;;  %v162_v53 = vld [vmem:[#allocation10 + $0xf0] sm:$0xff]  ;;  %v163_v54 = vld [vmem:[#allocation10 + $0xf8] sm:$0xff]  ;;  %4999 = vtanh.f32 %v5425_v48 }
  0x89   :  { %4167 = vmatprep.subr.bf16.mxu0 %v5399_v21  ;;  %v5438_v55 = vpack.c.bf16 %v145_v52, %v144_v51  ;;  %v5441_v56 = vpack.c.bf16 %v163_v54, %v162_v53  ;;  %v146_v57 = vld [vmem:[#allocation10 + $0x70] sm:$0xff]  ;;  %v147_v58 = vld [vmem:[#allocation10 + $0x78] sm:$0xff]  ;;  %v172_v1 = vld [vmem:[#allocation12 + $0x40] sm:$0xff] }
  0x8a   :  { %4191 = vmatpush3.bf16.msra.mxu1 %v5413_v38  ;;  %v5444_v59 = vpack.c.bf16 %v147_v58, %v146_v57  ;;  %v170_v61 = vld [vmem:[#allocation12 + $0x30] sm:$0xff]  ;;  %v171_v62 = vld [vmem:[#allocation12 + $0x38] sm:$0xff]  ;;  %v173_v2 = vld [vmem:[#allocation12 + $0x48] sm:$0xff] }
  0x8b   :  { %4192 = vmatprep.subr.bf16.mxu1 %v5228_v0  ;;  %v5449_v63 = vpack.c.bf16 %v171_v62, %v170_v61  ;;  %v5453_v3 = vpack.c.bf16 %v173_v2, %v172_v1  ;;  %v174_v5 = vld [vmem:[#allocation12 + $0x50] sm:$0xff]  ;;  %v175_v6 = vld [vmem:[#allocation12 + $0x58] sm:$0xff]  ;;  %v176_v10 = vld [vmem:[#allocation12 + $0x60] sm:$0xff] }
  0x8c   :  { %4169 = vmatpush3.bf16.msra.mxu0 %v5405_v29  ;;  %v5457_v7 = vpack.c.bf16 %v175_v6, %v174_v5  ;;  %v177_v11 = vld [vmem:[#allocation12 + $0x68] sm:$0xff]  ;;  %v178_v13 = vld [vmem:[#allocation12 + $0x70] sm:$0xff]  ;;  %v179_v16 = vld [vmem:[#allocation12 + $0x78] sm:$0xff] }
  0x8d   :  { %4171 = vmatprep.subr.bf16.mxu0 %v5410_v33  ;;  %v5461_v12 = vpack.c.bf16 %v177_v11, %v176_v10  ;;  %v5468_v18 = vpack.c.bf16 %v179_v16, %v178_v13  ;;  %v180_v19 = vld [vmem:[#allocation13] sm:$0xff]  ;;  %v181_v22 = vld [vmem:[#allocation13 + $0x8] sm:$0xff]  ;;  %v182_v23 = vld [vmem:[#allocation13 + $0x10] sm:$0xff] }
  0x8e   :  { %4194 = vmatpush3.bf16.msra.mxu1 %v5423_v47  ;;  %v5473_v24 = vpack.c.bf16 %v181_v22, %v180_v19  ;;  %v183_v25 = vld [vmem:[#allocation13 + $0x18] sm:$0xff]  ;;  %v184_v28 = vld [vmem:[#allocation13 + $0x20] sm:$0xff]  ;;  %v185_v31 = vld [vmem:[#allocation13 + $0x28] sm:$0xff] }
  0x8f   :  { %4195 = vmatprep.subr.bf16.mxu1 %v5228_v0  ;;  %v5476_v27 = vpack.c.bf16 %v183_v25, %v182_v23  ;;  %v5480_v32 = vpack.c.bf16 %v185_v31, %v184_v28  ;;  %v186_v34 = vld [vmem:[#allocation13 + $0x30] sm:$0xff]  ;;  %v187_v35 = vld [vmem:[#allocation13 + $0x38] sm:$0xff]  ;;  %v188_v37 = vld [vmem:[#allocation13 + $0x40] sm:$0xff] }
  0x90   :  { %4173 = vmatpush3.bf16.msra.mxu0 %v5417_v41  ;;  %v5484_v36 = vpack.c.bf16 %v187_v35, %v186_v34  ;;  %v189_v39 = vld [vmem:[#allocation13 + $0x48] sm:$0xff]  ;;  %v190_v43 = vld [vmem:[#allocation13 + $0x50] sm:$0xff]  ;;  %v191_v44 = vld [vmem:[#allocation13 + $0x58] sm:$0xff] }
  0x91   :  { %4175 = vmatprep.subr.bf16.mxu0 %v5420_v42  ;;  %v5488_v40 = vpack.c.bf16 %v189_v39, %v188_v37  ;;  %v5492_v45 = vpack.c.bf16 %v191_v44, %v190_v43  ;;  %v192_v46 = vld [vmem:[#allocation13 + $0x60] sm:$0xff]  ;;  %v193_v51 = vld [vmem:[#allocation13 + $0x68] sm:$0xff]  ;;  %v5504_v54 = vld [vmem:[%s6144_s7] ss:$0 sm:$0xff] }
  0x92   :  { %v5000_v60 = vpop.eup %4999  ;;  %4197 = vmatpush3.bf16.msra.mxu1 %v5449_v63  ;;  %v5496_v52 = vpack.c.bf16 %v193_v51, %v192_v46  ;;  %v194_v5 = vld [vmem:[#allocation13 + $0x70] sm:$0xff]  ;;  %v195_v6 = vld [vmem:[#allocation13 + $0x78] sm:$0xff]  ;;  %v197_v11 = vld [vmem:[#allocation15 + $0x8] sm:$0xff] }
  0x93   :  { %4198 = vmatprep.subr.bf16.mxu1 %v5228_v0  ;;  %v5516_v10 = vpack.c.bf16 %v195_v6, %v194_v5  ;;  %v198_v13 = vld [vmem:[#allocation15 + $0x10] sm:$0xff]  ;;  %v199_v19 = vld [vmem:[#allocation15 + $0x18] sm:$0xff]  ;;  %v200_v23 = vld [vmem:[#allocation15 + $0x20] sm:$0xff] }
  0x94   :  { %4177 = vmatpush3.bf16.msra.mxu0 %v5429_v49  ;;  %v5523_v22 = vpack.c.bf16 %v199_v19, %v198_v13  ;;  %v201_v25 = vld [vmem:[#allocation15 + $0x28] sm:$0xff]  ;;  %v202_v31 = vld [vmem:[#allocation15 + $0x30] sm:$0xff]  ;;  %v203_v34 = vld [vmem:[#allocation15 + $0x38] sm:$0xff] }
  0x95   :  { %4179 = vmatprep.subr.bf16.mxu0 %v5432_v50  ;;  %v5527_v28 = vpack.c.bf16 %v201_v25, %v200_v23  ;;  %v5531_v35 = vpack.c.bf16 %v203_v34, %v202_v31  ;;  %v204_v37 = vld [vmem:[#allocation15 + $0x40] sm:$0xff]  ;;  %v205_v39 = vld [vmem:[#allocation15 + $0x48] sm:$0xff]  ;;  %v206_v44 = vld [vmem:[#allocation15 + $0x50] sm:$0xff] }
  0x96   :  { %4200 = vmatpush3.bf16.msra.mxu1 %v5453_v3  ;;  %v5535_v43 = vpack.c.bf16 %v205_v39, %v204_v37  ;;  %v207_v46 = vld [vmem:[#allocation15 + $0x58] sm:$0xff] }
  0x97   :  { %4201 = vmatprep.subr.bf16.mxu1 %v5228_v0  ;;  %v5539_v51 = vpack.c.bf16 %v207_v46, %v206_v44  ;;  %v211_v13 = vld [vmem:[#allocation15 + $0x78] sm:$0xff] }
  0x98   :  { %4181 = vmatpush3.bf16.msra.mxu0 %v5438_v55 }
  0x99   :  { %4183 = vmatprep.subr.bf16.mxu0 %v5441_v56 }
  0x9a   :  { %4203 = vmatpush3.bf16.msra.mxu1 %v5457_v7 }
  0x9b   :  { %4204 = vmatprep.subr.bf16.mxu1 %v5228_v0 }
  0x9c   :  { %4185 = vmatpush3.bf16.msra.mxu0 %v5444_v59 }
  0x9d   :  { %4210 = vmatprep.subr.bf16.mxu0 %v5228_v0 }
  0x9e   :  { %4206 = vmatpush3.bf16.msra.mxu1 %v5461_v12 }
  0x9f   :  { %295 = vmatmul.mubr.f32.vlgmr.msra.gmra.mrb[0].mxu0 %v5000_v60  ;;  %4207 = vmatprep.subr.bf16.mxu1 %v5228_v0  ;;  %v229_v60 = vmul.f32 0.5, %v5425_v48  ;;  %v196_v48 = vld [vmem:[#allocation15] sm:$0xff] }
  0xa0   :  { %3381 = vmatprep.mubr.msk.f32.mxu0 %vm5229_vm0, %v5230_v17  ;;  %4212 = vmatpush3.bf16.msra.mxu0 %v5473_v24  ;;  %v5520_v16 = vpack.c.bf16 %v197_v11, %v196_v48  ;;  %v210_v11 = vld [vmem:[#allocation15 + $0x70] sm:$0xff] }
  0xa1   :  { %4213 = vmatprep.subr.bf16.mxu0 %v5228_v0  ;;  %v5570_v19 = vpack.c.bf16 %v211_v13, %v210_v11 }
  0xa2   :  { %4209 = vmatpush3.bf16.msra.mxu1 %v5468_v18 }
  0xa3   :  { %4234 = vmatprep.subr.bf16.mxu1 %v5228_v0 }
  0xa4   :  { %4215 = vmatpush3.bf16.msra.mxu0 %v5476_v27 }
  0xa5   :  { %4216 = vmatprep.subr.bf16.mxu0 %v5228_v0 }
  0xa8   :  { %4218 = vmatpush3.bf16.msra.mxu0 %v5480_v32 }
  0xa9   :  { %4219 = vmatprep.subr.bf16.mxu0 %v5228_v0 }
  0xac   :  { %4221 = vmatpush3.bf16.msra.mxu0 %v5484_v36 }
  0xad   :  { %4222 = vmatprep.subr.bf16.mxu0 %v5228_v0 }
  0xb0   :  { %4224 = vmatpush3.bf16.msra.mxu0 %v5488_v40 }
  0xb1   :  { %4225 = vmatprep.subr.bf16.mxu0 %v5228_v0 }
  0xb4   :  { %4227 = vmatpush3.bf16.msra.mxu0 %v5492_v45 }
  0xb5   :  { %4228 = vmatprep.subr.bf16.mxu0 %v5228_v0 }
  0xb8   :  { %4230 = vmatpush3.bf16.msra.mxu0 %v5496_v52 }
  0xb9   :  { %4231 = vmatprep.subr.bf16.mxu0 %v5228_v0 }
  0xbc   :  { %4233 = vmatpush3.bf16.msra.mxu0 %v5516_v10 }
  0xbd   :  { %4259 = vmatprep.subr.bf16.mxu0 %v5382_v4 }
 0x172   :  { %v2658_v53 = vpop.f32.mrb[0].mxu0 }
 0x173   :  { %v2659_v57 = vpop.f32.mrb[1].mxu0 }
 0x174   :  { %v2660_v58 = vadd.f32 %v2659_v57, %v2658_v53  ;;  %v208_v53 = vld [vmem:[#allocation15 + $0x60] sm:$0xff]  ;;  %v209_v57 = vld [vmem:[#allocation15 + $0x68] sm:$0xff] }
 0x176   :  { %v297_v61 = vadd.f32 %v2660_v58, %v5504_v54  ;;  %v5543_v58 = vpack.c.bf16 %v209_v57, %v208_v53 }
 0x178   :  { %v300_v62 = vmul.f32 0.5, %v297_v61 }
 0x17a   :  { %v5508_v1 = vadd.f32 %v300_v62, %v229_v60  ;;  %v5551_v60 = vld [vmem:[%s6145_s8] ss:$0 sm:$0xff] }
 0x17b   :  { %v373_v62 = vld [vmem:[#allocation4] sm:$0xff] }
 0x17c   :  { %5001 = vtanh.f32 %v5508_v1 }
 0x186   :  { %v5511_v2 = vpop.eup %5001 }
 0x187   :  { %3347 = vmatmul.mubr.f32.vlgmr.msra.gmra.mrb[0].mxu1 %v5511_v2  ;;  %v376_v23 = vmul.f32 %v5511_v2, %v5511_v2 }
 0x188   :  { %3416 = vmatprep.mubr.msk.f32.mxu1 %vm5229_vm0, %v5230_v17  ;;  %4236 = vmatpush3.bf16.msra.mxu1 %v5520_v16 }
 0x189   :  { %4237 = vmatprep.subr.bf16.mxu1 %v5228_v0  ;;  %v377_v25 = vsub.f32 1.0, %v376_v23 }
 0x18b   :  { %v378_v31 = vmul.f32 0.1, %v377_v25  ;;  %v669_v25 = vld [vmem:[#allocation4 + $0x8] sm:$0xff] }
 0x18c   :  { %4239 = vmatpush3.bf16.msra.mxu1 %v5523_v22 }
 0x18d   :  { %4240 = vmatprep.subr.bf16.mxu1 %v5228_v0 }
 0x190   :  { %4242 = vmatpush3.bf16.msra.mxu1 %v5527_v28 }
 0x191   :  { %4243 = vmatprep.subr.bf16.mxu1 %v5228_v0 }
 0x194   :  { %4245 = vmatpush3.bf16.msra.mxu1 %v5531_v35 }
 0x195   :  { %4246 = vmatprep.subr.bf16.mxu1 %v5228_v0 }
 0x198   :  { %4248 = vmatpush3.bf16.msra.mxu1 %v5535_v43 }
 0x199   :  { %4249 = vmatprep.subr.bf16.mxu1 %v5228_v0 }
 0x19c   :  { %4251 = vmatpush3.bf16.msra.mxu1 %v5539_v51 }
 0x19d   :  { %4252 = vmatprep.subr.bf16.mxu1 %v5228_v0 }
 0x1a0   :  { %4254 = vmatpush3.bf16.msra.mxu1 %v5543_v58 }
 0x1a1   :  { %4255 = vmatprep.subr.bf16.mxu1 %v5228_v0 }
 0x1a4   :  { %4257 = vmatpush3.bf16.msra.mxu1 %v5570_v19 }
 0x1a5   :  { %4290 = vmatprep.subr.bf16.mxu1 %v5228_v0 }
 0x25a   :  { %v369_v61 = vpop.f32.mrb[0].mxu1 }
 0x25b   :  { %v370_v5 = vadd.f32 %v5551_v60, %v369_v61  ;;  %v3348_v6 = vpop.f32.mrb[1].mxu1 }
 0x25d   :  { %v374_v48 = vsub.f32 %v370_v5, %v373_v62 }
 0x25f   :  { %375 = vst [vmem:[#allocation16] sm:$0xff] %v374_v48  ;;  %3382 = vmatmul.mubr.f32.vlgmr.msra.gmra.mrb[2].mxu0 %v374_v48 }
 0x260   :  { %4261 = vmatpush3.bf16.msra.mxu0 %v5384_v8 }
 0x261   :  { %4263 = vmatprep.subr.bf16.mxu0 %v5386_v9 }
 0x264   :  { %4265 = vmatpush3.bf16.msra.mxu0 %v5390_v14 }
 0x265   :  { %4267 = vmatprep.subr.bf16.mxu0 %v5393_v15 }
 0x268   :  { %4269 = vmatpush3.bf16.msra.mxu0 %v5396_v20 }
 0x269   :  { %4271 = vmatprep.subr.bf16.mxu0 %v5399_v21 }
 0x26c   :  { %4273 = vmatpush3.bf16.msra.mxu0 %v5405_v29 }
 0x26d   :  { %4275 = vmatprep.subr.bf16.mxu0 %v5410_v33 }
 0x270   :  { %4277 = vmatpush3.bf16.msra.mxu0 %v5417_v41 }
 0x271   :  { %4279 = vmatprep.subr.bf16.mxu0 %v5420_v42 }
 0x274   :  { %4281 = vmatpush3.bf16.msra.mxu0 %v5429_v49 }
 0x275   :  { %4283 = vmatprep.subr.bf16.mxu0 %v5432_v50 }
 0x278   :  { %4285 = vmatpush3.bf16.msra.mxu0 %v5438_v55 }
 0x279   :  { %4287 = vmatprep.subr.bf16.mxu0 %v5441_v56 }
 0x27c   :  { %4289 = vmatpush3.bf16.msra.mxu0 %v5444_v59 }
 0x27d   :  { %4314 = vmatprep.subr.bf16.mxu0 %v5228_v0 }
 0x332   :  { %v445_v34 = vpop.f32.mrb[2].mxu0 }
 0x333   :  { %v449_v37 = vmul.f32 %v445_v34, %v378_v31  ;;  %v3383_v39 = vpop.f32.mrb[3].mxu0 }
 0x335   :  { %3417 = vmatmul.mubr.f32.vlgmr.msra.gmra.mrb[2].mxu1 %v449_v37  ;;  %v450_v2 = vsub.f32 %v5508_v1, %v449_v37 }
 0x336   :  { %4292 = vmatpush3.bf16.msra.mxu1 %v5407_v30  ;;  %3451 = vmatprep.mubr.msk.f32.mxu1 %vm5229_vm0, %v5230_v17 }
 0x337   :  { %4293 = vmatprep.subr.bf16.mxu1 %v5228_v0  ;;  %5003 = vtanh.f32 %v450_v2  ;;  %v524_v6 = vmul.f32 0.5, %v450_v2 }
 0x33a   :  { %4295 = vmatpush3.bf16.msra.mxu1 %v5413_v38 }
 0x33b   :  { %4296 = vmatprep.subr.bf16.mxu1 %v5228_v0 }
 0x33e   :  { %4298 = vmatpush3.bf16.msra.mxu1 %v5423_v47 }
 0x33f   :  { %4299 = vmatprep.subr.bf16.mxu1 %v5228_v0 }
 0x341   :  { %v5004_v61 = vpop.eup %5003 }
 0x342   :  { %4301 = vmatpush3.bf16.msra.mxu1 %v5449_v63 }
 0x343   :  { %4302 = vmatprep.subr.bf16.mxu1 %v5228_v0 }
 0x346   :  { %4304 = vmatpush3.bf16.msra.mxu1 %v5453_v3 }
 0x347   :  { %4305 = vmatprep.subr.bf16.mxu1 %v5228_v0 }
 0x34a   :  { %4307 = vmatpush3.bf16.msra.mxu1 %v5457_v7 }
 0x34b   :  { %4308 = vmatprep.subr.bf16.mxu1 %v5228_v0 }
 0x34e   :  { %4310 = vmatpush3.bf16.msra.mxu1 %v5461_v12 }
 0x34f   :  { %4311 = vmatprep.subr.bf16.mxu1 %v5228_v0 }
 0x352   :  { %4313 = vmatpush3.bf16.msra.mxu1 %v5468_v18 }
 0x353   :  { %4338 = vmatprep.subr.bf16.mxu1 %v5228_v0 }
 0x408   :  { %v517_v44 = vpop.f32.mrb[2].mxu1 }
 0x409   :  { %v521_v46 = vmul.f32 0.05, %v517_v44  ;;  %v3418_v53 = vpop.f32.mrb[3].mxu1 }
 0x40b   :  { %v5596_v57 = vsub.f32 %v5401_v26, %v521_v46 }
 0x40d   :  { %589 = vmatprep.mubr.f32.mxu0 %v5596_v57 }
 0x40e   :  { %590 = vmatmul.mubr.f32.vlgmr.msra.gmra.mrb[4].mxu0 %v5004_v61 }
 0x40f   :  { %4316 = vmatpush3.bf16.msra.mxu0 %v5473_v24  ;;  %3486 = vmatprep.mubr.msk.f32.mxu0 %vm5229_vm0, %v5230_v17 }
 0x410   :  { %4317 = vmatprep.subr.bf16.mxu0 %v5228_v0 }
 0x413   :  { %4319 = vmatpush3.bf16.msra.mxu0 %v5476_v27 }
 0x414   :  { %4320 = vmatprep.subr.bf16.mxu0 %v5228_v0 }
 0x417   :  { %4322 = vmatpush3.bf16.msra.mxu0 %v5480_v32 }
 0x418   :  { %4323 = vmatprep.subr.bf16.mxu0 %v5228_v0 }
 0x41b   :  { %4325 = vmatpush3.bf16.msra.mxu0 %v5484_v36 }
 0x41c   :  { %4326 = vmatprep.subr.bf16.mxu0 %v5228_v0 }
 0x41f   :  { %4328 = vmatpush3.bf16.msra.mxu0 %v5488_v40 }
 0x420   :  { %4329 = vmatprep.subr.bf16.mxu0 %v5228_v0 }
 0x423   :  { %4331 = vmatpush3.bf16.msra.mxu0 %v5492_v45 }
 0x424   :  { %4332 = vmatprep.subr.bf16.mxu0 %v5228_v0 }
 0x427   :  { %4334 = vmatpush3.bf16.msra.mxu0 %v5496_v52 }
 0x428   :  { %4335 = vmatprep.subr.bf16.mxu0 %v5228_v0 }
 0x42b   :  { %4337 = vmatpush3.bf16.msra.mxu0 %v5516_v10 }
 0x42c   :  { %4363 = vmatprep.subr.bf16.mxu0 %v5382_v4 }
 0x4e1   :  { %v2744_v26 = vpop.f32.mrb[4].mxu0 }
 0x4e2   :  { %v2745_v1 = vpop.f32.mrb[5].mxu0 }
 0x4e3   :  { %v2746_v62 = vadd.f32 %v2745_v1, %v2744_v26 }
 0x4e5   :  { %v592_v5 = vadd.f32 %v2746_v62, %v5504_v54 }
 0x4e7   :  { %v595_v48 = vmul.f32 0.5, %v592_v5 }
 0x4e9   :  { %v5618_v11 = vadd.f32 %v595_v48, %v524_v6 }
 0x4eb   :  { %5005 = vtanh.f32 %v5618_v11 }
 0x4f5   :  { %v5006_v13 = vpop.eup %5005 }
 0x4f6   :  { %3452 = vmatmul.mubr.f32.vlgmr.msra.gmra.mrb[4].mxu1 %v5006_v13  ;;  %v673_v39 = vmul.f32 %v5006_v13, %v5006_v13 }
 0x4f7   :  { %4340 = vmatpush3.bf16.msra.mxu1 %v5520_v16  ;;  %3521 = vmatprep.mubr.msk.f32.mxu1 %vm5229_vm0, %v5230_v17 }
 0x4f8   :  { %4341 = vmatprep.subr.bf16.mxu1 %v5228_v0  ;;  %v674_v2 = vsub.f32 1.0, %v673_v39 }
 0x4fa   :  { %v675_v44 = vmul.f32 0.1, %v674_v2  ;;  %v966_v2 = vld [vmem:[#allocation4 + $0x10] sm:$0xff] }
 0x4fb   :  { %4343 = vmatpush3.bf16.msra.mxu1 %v5523_v22 }
 0x4fc   :  { %4344 = vmatprep.subr.bf16.mxu1 %v5228_v0 }
 0x4ff   :  { %4346 = vmatpush3.bf16.msra.mxu1 %v5527_v28 }
 0x500   :  { %4347 = vmatprep.subr.bf16.mxu1 %v5228_v0 }
 0x503   :  { %4349 = vmatpush3.bf16.msra.mxu1 %v5531_v35 }
 0x504   :  { %4350 = vmatprep.subr.bf16.mxu1 %v5228_v0 }
 0x507   :  { %4352 = vmatpush3.bf16.msra.mxu1 %v5535_v43 }
 0x508   :  { %4353 = vmatprep.subr.bf16.mxu1 %v5228_v0 }
 0x50b   :  { %4355 = vmatpush3.bf16.msra.mxu1 %v5539_v51 }
 0x50c   :  { %4356 = vmatprep.subr.bf16.mxu1 %v5228_v0 }
 0x50f   :  { %4358 = vmatpush3.bf16.msra.mxu1 %v5543_v58 }
 0x510   :  { %4359 = vmatprep.subr.bf16.mxu1 %v5228_v0 }
 0x513   :  { %4361 = vmatpush3.bf16.msra.mxu1 %v5570_v19 }
 0x514   :  { %4394 = vmatprep.subr.bf16.mxu1 %v5228_v0 }
 0x5c9   :  { %v664_v23 = vpop.f32.mrb[4].mxu1 }
 0x5ca   :  { %v665_v31 = vadd.f32 %v5551_v60, %v664_v23  ;;  %v3453_v34 = vpop.f32.mrb[5].mxu1 }
 0x5cc   :  { %v670_v37 = vsub.f32 %v665_v31, %v669_v25 }
 0x5ce   :  { %672 = vst [vmem:[#allocation16 + $0x8] sm:$0xff] %v670_v37  ;;  %3487 = vmatmul.mubr.f32.vlgmr.msra.gmra.mrb[6].mxu0 %v670_v37 }
 0x5cf   :  { %4365 = vmatpush3.bf16.msra.mxu0 %v5384_v8 }
 0x5d0   :  { %4367 = vmatprep.subr.bf16.mxu0 %v5386_v9 }
 0x5d3   :  { %4369 = vmatpush3.bf16.msra.mxu0 %v5390_v14 }
 0x5d4   :  { %4371 = vmatprep.subr.bf16.mxu0 %v5393_v15 }
 0x5d7   :  { %4373 = vmatpush3.bf16.msra.mxu0 %v5396_v20 }
 0x5d8   :  { %4375 = vmatprep.subr.bf16.mxu0 %v5399_v21 }
 0x5db   :  { %4377 = vmatpush3.bf16.msra.mxu0 %v5405_v29 }
 0x5dc   :  { %4379 = vmatprep.subr.bf16.mxu0 %v5410_v33 }
 0x5df   :  { %4381 = vmatpush3.bf16.msra.mxu0 %v5417_v41 }
 0x5e0   :  { %4383 = vmatprep.subr.bf16.mxu0 %v5420_v42 }
 0x5e3   :  { %4385 = vmatpush3.bf16.msra.mxu0 %v5429_v49 }
 0x5e4   :  { %4387 = vmatprep.subr.bf16.mxu0 %v5432_v50 }
 0x5e7   :  { %4389 = vmatpush3.bf16.msra.mxu0 %v5438_v55 }
 0x5e8   :  { %4391 = vmatprep.subr.bf16.mxu0 %v5441_v56 }
 0x5eb   :  { %4393 = vmatpush3.bf16.msra.mxu0 %v5444_v59 }
 0x5ec   :  { %4418 = vmatprep.subr.bf16.mxu0 %v5228_v0 }
 0x6a1   :  { %v742_v46 = vpop.f32.mrb[6].mxu0 }
 0x6a2   :  { %v746_v53 = vmul.f32 %v742_v46, %v675_v44  ;;  %v3488_v61 = vpop.f32.mrb[7].mxu0 }
 0x6a4   :  { %3522 = vmatmul.mubr.f32.vlgmr.msra.gmra.mrb[6].mxu1 %v746_v53  ;;  %v747_v26 = vsub.f32 %v5618_v11, %v746_v53 }
 0x6a5   :  { %4396 = vmatpush3.bf16.msra.mxu1 %v5407_v30  ;;  %3556 = vmatprep.mubr.msk.f32.mxu1 %vm5229_vm0, %v5230_v17 }
 0x6a6   :  { %4397 = vmatprep.subr.bf16.mxu1 %v5228_v0  ;;  %5007 = vtanh.f32 %v747_v26  ;;  %v821_v25 = vmul.f32 0.5, %v747_v26 }
 0x6a9   :  { %4399 = vmatpush3.bf16.msra.mxu1 %v5413_v38 }
 0x6aa   :  { %4400 = vmatprep.subr.bf16.mxu1 %v5228_v0 }
 0x6ad   :  { %4402 = vmatpush3.bf16.msra.mxu1 %v5423_v47 }
 0x6ae   :  { %4403 = vmatprep.subr.bf16.mxu1 %v5228_v0 }
 0x6b0   :  { %v5008_v48 = vpop.eup %5007 }
 0x6b1   :  { %4405 = vmatpush3.bf16.msra.mxu1 %v5449_v63 }
 0x6b2   :  { %4406 = vmatprep.subr.bf16.mxu1 %v5228_v0 }
 0x6b5   :  { %4408 = vmatpush3.bf16.msra.mxu1 %v5453_v3 }
 0x6b6   :  { %4409 = vmatprep.subr.bf16.mxu1 %v5228_v0 }
 0x6b9   :  { %4411 = vmatpush3.bf16.msra.mxu1 %v5457_v7 }
 0x6ba   :  { %4412 = vmatprep.subr.bf16.mxu1 %v5228_v0 }
 0x6bd   :  { %4414 = vmatpush3.bf16.msra.mxu1 %v5461_v12 }
 0x6be   :  { %4415 = vmatprep.subr.bf16.mxu1 %v5228_v0 }
 0x6c1   :  { %4417 = vmatpush3.bf16.msra.mxu1 %v5468_v18 }
 0x6c2   :  { %4442 = vmatprep.subr.bf16.mxu1 %v5228_v0 }
 0x777   :  { %v814_v1 = vpop.f32.mrb[6].mxu1 }
 0x778   :  { %v818_v62 = vmul.f32 0.05, %v814_v1  ;;  %v3523_v5 = vpop.f32.mrb[7].mxu1 }
 0x77a   :  { %v5676_v6 = vsub.f32 %v5596_v57, %v818_v62 }
 0x77c   :  { %886 = vmatprep.mubr.f32.mxu0 %v5676_v6 }
 0x77d   :  { %887 = vmatmul.mubr.f32.vlgmr.msra.gmra.mrb[8].mxu0 %v5008_v48 }
 0x77e   :  { %4420 = vmatpush3.bf16.msra.mxu0 %v5473_v24  ;;  %3591 = vmatprep.mubr.msk.f32.mxu0 %vm5229_vm0, %v5230_v17 }
 0x77f   :  { %4421 = vmatprep.subr.bf16.mxu0 %v5228_v0 }
 0x782   :  { %4423 = vmatpush3.bf16.msra.mxu0 %v5476_v27 }
 0x783   :  { %4424 = vmatprep.subr.bf16.mxu0 %v5228_v0 }
 0x786   :  { %4426 = vmatpush3.bf16.msra.mxu0 %v5480_v32 }
 0x787   :  { %4427 = vmatprep.subr.bf16.mxu0 %v5228_v0 }
 0x78a   :  { %4429 = vmatpush3.bf16.msra.mxu0 %v5484_v36 }
 0x78b   :  { %4430 = vmatprep.subr.bf16.mxu0 %v5228_v0 }
 0x78e   :  { %4432 = vmatpush3.bf16.msra.mxu0 %v5488_v40 }
 0x78f   :  { %4433 = vmatprep.subr.bf16.mxu0 %v5228_v0 }
 0x792   :  { %4435 = vmatpush3.bf16.msra.mxu0 %v5492_v45 }
 0x793   :  { %4436 = vmatprep.subr.bf16.mxu0 %v5228_v0 }
 0x796   :  { %4438 = vmatpush3.bf16.msra.mxu0 %v5496_v52 }
 0x797   :  { %4439 = vmatprep.subr.bf16.mxu0 %v5228_v0 }
 0x79a   :  { %4441 = vmatpush3.bf16.msra.mxu0 %v5516_v10 }
 0x79b   :  { %4467 = vmatprep.subr.bf16.mxu0 %v5382_v4 }
 0x850   :  { %v2830_v57 = vpop.f32.mrb[8].mxu0 }
 0x851   :  { %v2831_v11 = vpop.f32.mrb[9].mxu0 }
 0x852   :  { %v2832_v13 = vadd.f32 %v2831_v11, %v2830_v57 }
 0x854   :  { %v889_v23 = vadd.f32 %v2832_v13, %v5504_v54 }
 0x856   :  { %v892_v31 = vmul.f32 0.5, %v889_v23 }
 0x858   :  { %v5698_v34 = vadd.f32 %v892_v31, %v821_v25 }
 0x85a   :  { %5009 = vtanh.f32 %v5698_v34 }
 0x864   :  { %v5010_v37 = vpop.eup %5009 }
 0x865   :  { %3557 = vmatmul.mubr.f32.vlgmr.msra.gmra.mrb[8].mxu1 %v5010_v37  ;;  %v970_v61 = vmul.f32 %v5010_v37, %v5010_v37 }
 0x866   :  { %4444 = vmatpush3.bf16.msra.mxu1 %v5520_v16  ;;  %3626 = vmatprep.mubr.msk.f32.mxu1 %vm5229_vm0, %v5230_v17 }
 0x867   :  { %4445 = vmatprep.subr.bf16.mxu1 %v5228_v0  ;;  %v971_v26 = vsub.f32 1.0, %v970_v61 }
 0x869   :  { %v972_v1 = vmul.f32 0.1, %v971_v26  ;;  %v1263_v26 = vld [vmem:[#allocation4 + $0x18] sm:$0xff] }
 0x86a   :  { %4447 = vmatpush3.bf16.msra.mxu1 %v5523_v22 }
 0x86b   :  { %4448 = vmatprep.subr.bf16.mxu1 %v5228_v0 }
 0x86e   :  { %4450 = vmatpush3.bf16.msra.mxu1 %v5527_v28 }
 0x86f   :  { %4451 = vmatprep.subr.bf16.mxu1 %v5228_v0 }
 0x872   :  { %4453 = vmatpush3.bf16.msra.mxu1 %v5531_v35 }
 0x873   :  { %4454 = vmatprep.subr.bf16.mxu1 %v5228_v0 }
 0x876   :  { %4456 = vmatpush3.bf16.msra.mxu1 %v5535_v43 }
 0x877   :  { %4457 = vmatprep.subr.bf16.mxu1 %v5228_v0 }
 0x87a   :  { %4459 = vmatpush3.bf16.msra.mxu1 %v5539_v51 }
 0x87b   :  { %4460 = vmatprep.subr.bf16.mxu1 %v5228_v0 }
 0x87e   :  { %4462 = vmatpush3.bf16.msra.mxu1 %v5543_v58 }
 0x87f   :  { %4463 = vmatprep.subr.bf16.mxu1 %v5228_v0 }
 0x882   :  { %4465 = vmatpush3.bf16.msra.mxu1 %v5570_v19 }
 0x883   :  { %4498 = vmatprep.subr.bf16.mxu1 %v5228_v0 }
 0x938   :  { %v961_v39 = vpop.f32.mrb[8].mxu1 }
 0x939   :  { %v962_v44 = vadd.f32 %v5551_v60, %v961_v39  ;;  %v3558_v46 = vpop.f32.mrb[9].mxu1 }
 0x93b   :  { %v967_v53 = vsub.f32 %v962_v44, %v966_v2 }
 0x93d   :  { %969 = vst [vmem:[#allocation16 + $0x10] sm:$0xff] %v967_v53  ;;  %3592 = vmatmul.mubr.f32.vlgmr.msra.gmra.mrb[10].mxu0 %v967_v53 }
 0x93e   :  { %4469 = vmatpush3.bf16.msra.mxu0 %v5384_v8 }
 0x93f   :  { %4471 = vmatprep.subr.bf16.mxu0 %v5386_v9 }
 0x942   :  { %4473 = vmatpush3.bf16.msra.mxu0 %v5390_v14 }
 0x943   :  { %4475 = vmatprep.subr.bf16.mxu0 %v5393_v15 }
 0x946   :  { %4477 = vmatpush3.bf16.msra.mxu0 %v5396_v20 }
 0x947   :  { %4479 = vmatprep.subr.bf16.mxu0 %v5399_v21 }
 0x94a   :  { %4481 = vmatpush3.bf16.msra.mxu0 %v5405_v29 }
 0x94b   :  { %4483 = vmatprep.subr.bf16.mxu0 %v5410_v33 }
 0x94e   :  { %4485 = vmatpush3.bf16.msra.mxu0 %v5417_v41 }
 0x94f   :  { %4487 = vmatprep.subr.bf16.mxu0 %v5420_v42 }
 0x952   :  { %4489 = vmatpush3.bf16.msra.mxu0 %v5429_v49 }
 0x953   :  { %4491 = vmatprep.subr.bf16.mxu0 %v5432_v50 }
 0x956   :  { %4493 = vmatpush3.bf16.msra.mxu0 %v5438_v55 }
 0x957   :  { %4495 = vmatprep.subr.bf16.mxu0 %v5441_v56 }
 0x95a   :  { %4497 = vmatpush3.bf16.msra.mxu0 %v5444_v59 }
 0x95b   :  { %4522 = vmatprep.subr.bf16.mxu0 %v5228_v0 }
 0xa10   :  { %v1039_v62 = vpop.f32.mrb[10].mxu0 }
 0xa11   :  { %v1043_v5 = vmul.f32 %v1039_v62, %v972_v1  ;;  %v3593_v48 = vpop.f32.mrb[11].mxu0 }
 0xa13   :  { %3627 = vmatmul.mubr.f32.vlgmr.msra.gmra.mrb[10].mxu1 %v1043_v5  ;;  %v1044_v57 = vsub.f32 %v5698_v34, %v1043_v5 }
 0xa14   :  { %4500 = vmatpush3.bf16.msra.mxu1 %v5407_v30  ;;  %3661 = vmatprep.mubr.msk.f32.mxu1 %vm5229_vm0, %v5230_v17 }
 0xa15   :  { %4501 = vmatprep.subr.bf16.mxu1 %v5228_v0  ;;  %5011 = vtanh.f32 %v1044_v57  ;;  %v1118_v2 = vmul.f32 0.5, %v1044_v57 }
 0xa18   :  { %4503 = vmatpush3.bf16.msra.mxu1 %v5413_v38 }
 0xa19   :  { %4504 = vmatprep.subr.bf16.mxu1 %v5228_v0 }
 0xa1c   :  { %4506 = vmatpush3.bf16.msra.mxu1 %v5423_v47 }
 0xa1d   :  { %4507 = vmatprep.subr.bf16.mxu1 %v5228_v0 }
 0xa1f   :  { %v5012_v31 = vpop.eup %5011 }
 0xa20   :  { %4509 = vmatpush3.bf16.msra.mxu1 %v5449_v63 }
 0xa21   :  { %4510 = vmatprep.subr.bf16.mxu1 %v5228_v0 }
 0xa24   :  { %4512 = vmatpush3.bf16.msra.mxu1 %v5453_v3 }
 0xa25   :  { %4513 = vmatprep.subr.bf16.mxu1 %v5228_v0 }
 0xa28   :  { %4515 = vmatpush3.bf16.msra.mxu1 %v5457_v7 }
 0xa29   :  { %4516 = vmatprep.subr.bf16.mxu1 %v5228_v0 }
 0xa2c   :  { %4518 = vmatpush3.bf16.msra.mxu1 %v5461_v12 }
 0xa2d   :  { %4519 = vmatprep.subr.bf16.mxu1 %v5228_v0 }
 0xa30   :  { %4521 = vmatpush3.bf16.msra.mxu1 %v5468_v18 }
 0xa31   :  { %4546 = vmatprep.subr.bf16.mxu1 %v5228_v0 }
 0xae6   :  { %v1111_v11 = vpop.f32.mrb[10].mxu1 }
 0xae7   :  { %v1115_v13 = vmul.f32 0.05, %v1111_v11  ;;  %v3628_v23 = vpop.f32.mrb[11].mxu1 }
 0xae9   :  { %v5756_v25 = vsub.f32 %v5676_v6, %v1115_v13 }
 0xaeb   :  { %1183 = vmatprep.mubr.f32.mxu0 %v5756_v25 }
 0xaec   :  { %1184 = vmatmul.mubr.f32.vlgmr.msra.gmra.mrb[12].mxu0 %v5012_v31 }
 0xaed   :  { %4524 = vmatpush3.bf16.msra.mxu0 %v5473_v24  ;;  %3696 = vmatprep.mubr.msk.f32.mxu0 %vm5229_vm0, %v5230_v17 }
 0xaee   :  { %4525 = vmatprep.subr.bf16.mxu0 %v5228_v0 }
 0xaf1   :  { %4527 = vmatpush3.bf16.msra.mxu0 %v5476_v27 }
 0xaf2   :  { %4528 = vmatprep.subr.bf16.mxu0 %v5228_v0 }
 0xaf5   :  { %4530 = vmatpush3.bf16.msra.mxu0 %v5480_v32 }
 0xaf6   :  { %4531 = vmatprep.subr.bf16.mxu0 %v5228_v0 }
 0xaf9   :  { %4533 = vmatpush3.bf16.msra.mxu0 %v5484_v36 }
 0xafa   :  { %4534 = vmatprep.subr.bf16.mxu0 %v5228_v0 }
 0xafd   :  { %4536 = vmatpush3.bf16.msra.mxu0 %v5488_v40 }
 0xafe   :  { %4537 = vmatprep.subr.bf16.mxu0 %v5228_v0 }
 0xb01   :  { %4539 = vmatpush3.bf16.msra.mxu0 %v5492_v45 }
 0xb02   :  { %4540 = vmatprep.subr.bf16.mxu0 %v5228_v0 }
 0xb05   :  { %4542 = vmatpush3.bf16.msra.mxu0 %v5496_v52 }
 0xb06   :  { %4543 = vmatprep.subr.bf16.mxu0 %v5228_v0 }
 0xb09   :  { %4545 = vmatpush3.bf16.msra.mxu0 %v5516_v10 }
 0xb0a   :  { %4571 = vmatprep.subr.bf16.mxu0 %v5382_v4 }
 0xbbf   :  { %v2916_v6 = vpop.f32.mrb[12].mxu0 }
 0xbc0   :  { %v2917_v34 = vpop.f32.mrb[13].mxu0 }
 0xbc1   :  { %v2918_v37 = vadd.f32 %v2917_v34, %v2916_v6 }
 0xbc3   :  { %v1186_v39 = vadd.f32 %v2918_v37, %v5504_v54 }
 0xbc5   :  { %v1189_v44 = vmul.f32 0.5, %v1186_v39 }
 0xbc7   :  { %v5778_v46 = vadd.f32 %v1189_v44, %v1118_v2 }
 0xbc9   :  { %5013 = vtanh.f32 %v5778_v46 }
 0xbd3   :  { %v5014_v53 = vpop.eup %5013 }
 0xbd4   :  { %3662 = vmatmul.mubr.f32.vlgmr.msra.gmra.mrb[12].mxu1 %v5014_v53  ;;  %v1267_v48 = vmul.f32 %v5014_v53, %v5014_v53 }
 0xbd5   :  { %4548 = vmatpush3.bf16.msra.mxu1 %v5520_v16  ;;  %3731 = vmatprep.mubr.msk.f32.mxu1 %vm5229_vm0, %v5230_v17 }
 0xbd6   :  { %4549 = vmatprep.subr.bf16.mxu1 %v5228_v0  ;;  %v1268_v57 = vsub.f32 1.0, %v1267_v48  ;;  %v1560_v48 = vld [vmem:[#allocation4 + $0x20] sm:$0xff] }
 0xbd8   :  { %v1269_v11 = vmul.f32 0.1, %v1268_v57 }
 0xbd9   :  { %4551 = vmatpush3.bf16.msra.mxu1 %v5523_v22 }
 0xbda   :  { %4552 = vmatprep.subr.bf16.mxu1 %v5228_v0 }
 0xbdd   :  { %4554 = vmatpush3.bf16.msra.mxu1 %v5527_v28 }
 0xbde   :  { %4555 = vmatprep.subr.bf16.mxu1 %v5228_v0 }
 0xbe1   :  { %4557 = vmatpush3.bf16.msra.mxu1 %v5531_v35 }
 0xbe2   :  { %4558 = vmatprep.subr.bf16.mxu1 %v5228_v0 }
 0xbe5   :  { %4560 = vmatpush3.bf16.msra.mxu1 %v5535_v43 }
 0xbe6   :  { %4561 = vmatprep.subr.bf16.mxu1 %v5228_v0 }
 0xbe9   :  { %4563 = vmatpush3.bf16.msra.mxu1 %v5539_v51 }
 0xbea   :  { %4564 = vmatprep.subr.bf16.mxu1 %v5228_v0 }
 0xbed   :  { %4566 = vmatpush3.bf16.msra.mxu1 %v5543_v58 }
 0xbee   :  { %4567 = vmatprep.subr.bf16.mxu1 %v5228_v0 }
 0xbf1   :  { %4569 = vmatpush3.bf16.msra.mxu1 %v5570_v19 }
 0xbf2   :  { %4602 = vmatprep.subr.bf16.mxu1 %v5228_v0 }
 0xca7   :  { %v1258_v61 = vpop.f32.mrb[12].mxu1 }
 0xca8   :  { %v1259_v1 = vadd.f32 %v5551_v60, %v1258_v61  ;;  %v3663_v62 = vpop.f32.mrb[13].mxu1 }
 0xcaa   :  { %v1264_v5 = vsub.f32 %v1259_v1, %v1263_v26 }
 0xcac   :  { %1266 = vst [vmem:[#allocation16 + $0x18] sm:$0xff] %v1264_v5  ;;  %3697 = vmatmul.mubr.f32.vlgmr.msra.gmra.mrb[14].mxu0 %v1264_v5 }
 0xcad   :  { %4573 = vmatpush3.bf16.msra.mxu0 %v5384_v8 }
 0xcae   :  { %4575 = vmatprep.subr.bf16.mxu0 %v5386_v9 }
 0xcb1   :  { %4577 = vmatpush3.bf16.msra.mxu0 %v5390_v14 }
 0xcb2   :  { %4579 = vmatprep.subr.bf16.mxu0 %v5393_v15 }
 0xcb5   :  { %4581 = vmatpush3.bf16.msra.mxu0 %v5396_v20 }
 0xcb6   :  { %4583 = vmatprep.subr.bf16.mxu0 %v5399_v21 }
 0xcb9   :  { %4585 = vmatpush3.bf16.msra.mxu0 %v5405_v29 }
 0xcba   :  { %4587 = vmatprep.subr.bf16.mxu0 %v5410_v33 }
 0xcbd   :  { %4589 = vmatpush3.bf16.msra.mxu0 %v5417_v41 }
 0xcbe   :  { %4591 = vmatprep.subr.bf16.mxu0 %v5420_v42 }
 0xcc1   :  { %4593 = vmatpush3.bf16.msra.mxu0 %v5429_v49 }
 0xcc2   :  { %4595 = vmatprep.subr.bf16.mxu0 %v5432_v50 }
 0xcc5   :  { %4597 = vmatpush3.bf16.msra.mxu0 %v5438_v55 }
 0xcc6   :  { %4599 = vmatprep.subr.bf16.mxu0 %v5441_v56 }
 0xcc9   :  { %4601 = vmatpush3.bf16.msra.mxu0 %v5444_v59 }
 0xcca   :  { %4626 = vmatprep.subr.bf16.mxu0 %v5228_v0 }
 0xd7f   :  { %v1336_v13 = vpop.f32.mrb[14].mxu0 }
 0xd80   :  { %v1340_v23 = vmul.f32 %v1336_v13, %v1269_v11  ;;  %v3698_v31 = vpop.f32.mrb[15].mxu0 }
 0xd82   :  { %3732 = vmatmul.mubr.f32.vlgmr.msra.gmra.mrb[14].mxu1 %v1340_v23  ;;  %v1341_v6 = vsub.f32 %v5778_v46, %v1340_v23 }
 0xd83   :  { %4604 = vmatpush3.bf16.msra.mxu1 %v5407_v30  ;;  %3766 = vmatprep.mubr.msk.f32.mxu1 %vm5229_vm0, %v5230_v17 }
 0xd84   :  { %4605 = vmatprep.subr.bf16.mxu1 %v5228_v0  ;;  %5015 = vtanh.f32 %v1341_v6  ;;  %v1415_v26 = vmul.f32 0.5, %v1341_v6 }
 0xd87   :  { %4607 = vmatpush3.bf16.msra.mxu1 %v5413_v38 }
 0xd88   :  { %4608 = vmatprep.subr.bf16.mxu1 %v5228_v0 }
 0xd8b   :  { %4610 = vmatpush3.bf16.msra.mxu1 %v5423_v47 }
 0xd8c   :  { %4611 = vmatprep.subr.bf16.mxu1 %v5228_v0 }
 0xd8e   :  { %v5016_v44 = vpop.eup %5015 }
 0xd8f   :  { %4613 = vmatpush3.bf16.msra.mxu1 %v5449_v63 }
 0xd90   :  { %4614 = vmatprep.subr.bf16.mxu1 %v5228_v0 }
 0xd93   :  { %4616 = vmatpush3.bf16.msra.mxu1 %v5453_v3 }
 0xd94   :  { %4617 = vmatprep.subr.bf16.mxu1 %v5228_v0 }
 0xd97   :  { %4619 = vmatpush3.bf16.msra.mxu1 %v5457_v7 }
 0xd98   :  { %4620 = vmatprep.subr.bf16.mxu1 %v5228_v0 }
 0xd9b   :  { %4622 = vmatpush3.bf16.msra.mxu1 %v5461_v12 }
 0xd9c   :  { %4623 = vmatprep.subr.bf16.mxu1 %v5228_v0 }
 0xd9f   :  { %4625 = vmatpush3.bf16.msra.mxu1 %v5468_v18 }
 0xda0   :  { %4650 = vmatprep.subr.bf16.mxu1 %v5228_v0 }
 0xe55   :  { %v1408_v34 = vpop.f32.mrb[14].mxu1 }
 0xe56   :  { %v1412_v37 = vmul.f32 0.05, %v1408_v34  ;;  %v3733_v39 = vpop.f32.mrb[15].mxu1 }
 0xe58   :  { %v5836_v2 = vsub.f32 %v5756_v25, %v1412_v37 }
 0xe5a   :  { %1480 = vmatprep.mubr.f32.mxu0 %v5836_v2 }
 0xe5b   :  { %1481 = vmatmul.mubr.f32.vlgmr.msra.gmra.mrb[16].mxu0 %v5016_v44 }
 0xe5c   :  { %4628 = vmatpush3.bf16.msra.mxu0 %v5473_v24  ;;  %3801 = vmatprep.mubr.msk.f32.mxu0 %vm5229_vm0, %v5230_v17 }
 0xe5d   :  { %4629 = vmatprep.subr.bf16.mxu0 %v5228_v0 }
 0xe60   :  { %4631 = vmatpush3.bf16.msra.mxu0 %v5476_v27 }
 0xe61   :  { %4632 = vmatprep.subr.bf16.mxu0 %v5228_v0 }
 0xe64   :  { %4634 = vmatpush3.bf16.msra.mxu0 %v5480_v32 }
 0xe65   :  { %4635 = vmatprep.subr.bf16.mxu0 %v5228_v0 }
 0xe68   :  { %4637 = vmatpush3.bf16.msra.mxu0 %v5484_v36 }
 0xe69   :  { %4638 = vmatprep.subr.bf16.mxu0 %v5228_v0 }
 0xe6c   :  { %4640 = vmatpush3.bf16.msra.mxu0 %v5488_v40 }
 0xe6d   :  { %4641 = vmatprep.subr.bf16.mxu0 %v5228_v0 }
 0xe70   :  { %4643 = vmatpush3.bf16.msra.mxu0 %v5492_v45 }
 0xe71   :  { %4644 = vmatprep.subr.bf16.mxu0 %v5228_v0 }
 0xe74   :  { %4646 = vmatpush3.bf16.msra.mxu0 %v5496_v52 }
 0xe75   :  { %4647 = vmatprep.subr.bf16.mxu0 %v5228_v0 }
 0xe78   :  { %4649 = vmatpush3.bf16.msra.mxu0 %v5516_v10 }
 0xe79   :  { %4675 = vmatprep.subr.bf16.mxu0 %v5382_v4 }
 0xf2e   :  { %v3002_v25 = vpop.f32.mrb[16].mxu0 }
 0xf2f   :  { %v3003_v46 = vpop.f32.mrb[17].mxu0 }
 0xf30   :  { %v3004_v53 = vadd.f32 %v3003_v46, %v3002_v25 }
 0xf32   :  { %v1483_v61 = vadd.f32 %v3004_v53, %v5504_v54 }
 0xf34   :  { %v1486_v1 = vmul.f32 0.5, %v1483_v61 }
 0xf36   :  { %v5858_v62 = vadd.f32 %v1486_v1, %v1415_v26 }
 0xf38   :  { %5017 = vtanh.f32 %v5858_v62 }
 0xf42   :  { %v5018_v5 = vpop.eup %5017 }
 0xf43   :  { %3767 = vmatmul.mubr.f32.vlgmr.msra.gmra.mrb[16].mxu1 %v5018_v5  ;;  %v1564_v23 = vmul.f32 %v5018_v5, %v5018_v5  ;;  %v5940_v5 = vld [vmem:[%s6144_s7] ss:$0 sm:$0xff] }
 0xf44   :  { %4652 = vmatpush3.bf16.msra.mxu1 %v5520_v16  ;;  %3836 = vmatprep.mubr.msk.f32.mxu1 %vm5229_vm0, %v5230_v17 }
 0xf45   :  { %4653 = vmatprep.subr.bf16.mxu1 %v5228_v0  ;;  %v1565_v31 = vsub.f32 1.0, %v1564_v23 }
 0xf47   :  { %v1566_v6 = vmul.f32 0.1, %v1565_v31  ;;  %v1857_v31 = vld [vmem:[#allocation4 + $0x28] sm:$0xff] }
 0xf48   :  { %4655 = vmatpush3.bf16.msra.mxu1 %v5523_v22 }
 0xf49   :  { %4656 = vmatprep.subr.bf16.mxu1 %v5228_v0 }
 0xf4c   :  { %4658 = vmatpush3.bf16.msra.mxu1 %v5527_v28 }
 0xf4d   :  { %4659 = vmatprep.subr.bf16.mxu1 %v5228_v0 }
 0xf50   :  { %4661 = vmatpush3.bf16.msra.mxu1 %v5531_v35 }
 0xf51   :  { %4662 = vmatprep.subr.bf16.mxu1 %v5228_v0 }
 0xf54   :  { %4664 = vmatpush3.bf16.msra.mxu1 %v5535_v43 }
 0xf55   :  { %4665 = vmatprep.subr.bf16.mxu1 %v5228_v0 }
 0xf58   :  { %4667 = vmatpush3.bf16.msra.mxu1 %v5539_v51 }
 0xf59   :  { %4668 = vmatprep.subr.bf16.mxu1 %v5228_v0 }
 0xf5c   :  { %4670 = vmatpush3.bf16.msra.mxu1 %v5543_v58 }
 0xf5d   :  { %4671 = vmatprep.subr.bf16.mxu1 %v5228_v0 }
 0xf60   :  { %4673 = vmatpush3.bf16.msra.mxu1 %v5570_v19 }
 0xf61   :  { %4706 = vmatprep.subr.bf16.mxu1 %v5228_v0 }
0x1016   :  { %v1555_v54 = vpop.f32.mrb[16].mxu1 }
0x1017   :  { %v1556_v57 = vadd.f32 %v5551_v60, %v1555_v54  ;;  %v3768_v11 = vpop.f32.mrb[17].mxu1 }
0x1019   :  { %v1561_v13 = vsub.f32 %v1556_v57, %v1560_v48 }
0x101b   :  { %1563 = vst [vmem:[#allocation16 + $0x20] sm:$0xff] %v1561_v13  ;;  %3802 = vmatmul.mubr.f32.vlgmr.msra.gmra.mrb[18].mxu0 %v1561_v13 }
0x101c   :  { %4677 = vmatpush3.bf16.msra.mxu0 %v5384_v8 }
0x101d   :  { %4679 = vmatprep.subr.bf16.mxu0 %v5386_v9 }
0x1020   :  { %4681 = vmatpush3.bf16.msra.mxu0 %v5390_v14 }
0x1021   :  { %4683 = vmatprep.subr.bf16.mxu0 %v5393_v15 }
0x1024   :  { %4685 = vmatpush3.bf16.msra.mxu0 %v5396_v20 }
0x1025   :  { %4687 = vmatprep.subr.bf16.mxu0 %v5399_v21 }
0x1028   :  { %4689 = vmatpush3.bf16.msra.mxu0 %v5405_v29 }
0x1029   :  { %4691 = vmatprep.subr.bf16.mxu0 %v5410_v33 }
0x102c   :  { %4693 = vmatpush3.bf16.msra.mxu0 %v5417_v41 }
0x102d   :  { %4695 = vmatprep.subr.bf16.mxu0 %v5420_v42 }
0x1030   :  { %4697 = vmatpush3.bf16.msra.mxu0 %v5429_v49 }
0x1031   :  { %4699 = vmatprep.subr.bf16.mxu0 %v5432_v50 }
0x1034   :  { %4701 = vmatpush3.bf16.msra.mxu0 %v5438_v55 }
0x1035   :  { %4703 = vmatprep.subr.bf16.mxu0 %v5441_v56 }
0x1038   :  { %4705 = vmatpush3.bf16.msra.mxu0 %v5444_v59 }
0x1039   :  { %4730 = vmatprep.subr.bf16.mxu0 %v5228_v0 }
0x10ee   :  { %v1633_v34 = vpop.f32.mrb[18].mxu0 }
0x10ef   :  { %v1637_v37 = vmul.f32 %v1633_v34, %v1566_v6  ;;  %v3803_v39 = vpop.f32.mrb[19].mxu0 }
0x10f1   :  { %3837 = vmatmul.mubr.f32.vlgmr.msra.gmra.mrb[18].mxu1 %v1637_v37  ;;  %v1638_v44 = vsub.f32 %v5858_v62, %v1637_v37 }
0x10f2   :  { %4708 = vmatpush3.bf16.msra.mxu1 %v5407_v30  ;;  %3871 = vmatprep.mubr.msk.f32.mxu1 %vm5229_vm0, %v5230_v17 }
0x10f3   :  { %4709 = vmatprep.subr.bf16.mxu1 %v5228_v0  ;;  %5019 = vtanh.f32 %v1638_v44  ;;  %v1712_v48 = vmul.f32 0.5, %v1638_v44 }
0x10f6   :  { %4711 = vmatpush3.bf16.msra.mxu1 %v5413_v38 }
0x10f7   :  { %4712 = vmatprep.subr.bf16.mxu1 %v5228_v0 }
0x10fa   :  { %4714 = vmatpush3.bf16.msra.mxu1 %v5423_v47 }
0x10fb   :  { %4715 = vmatprep.subr.bf16.mxu1 %v5228_v0 }
0x10fd   :  { %v5020_v26 = vpop.eup %5019 }
0x10fe   :  { %4717 = vmatpush3.bf16.msra.mxu1 %v5449_v63 }
0x10ff   :  { %4718 = vmatprep.subr.bf16.mxu1 %v5228_v0 }
0x1102   :  { %4720 = vmatpush3.bf16.msra.mxu1 %v5453_v3 }
0x1103   :  { %4721 = vmatprep.subr.bf16.mxu1 %v5228_v0 }
0x1106   :  { %4723 = vmatpush3.bf16.msra.mxu1 %v5457_v7 }
0x1107   :  { %4724 = vmatprep.subr.bf16.mxu1 %v5228_v0 }
0x110a   :  { %4726 = vmatpush3.bf16.msra.mxu1 %v5461_v12 }
0x110b   :  { %4727 = vmatprep.subr.bf16.mxu1 %v5228_v0 }
0x110e   :  { %4729 = vmatpush3.bf16.msra.mxu1 %v5468_v18 }
0x110f   :  { %4754 = vmatprep.subr.bf16.mxu1 %v5228_v0 }
0x11c4   :  { %v1705_v25 = vpop.f32.mrb[18].mxu1 }
0x11c5   :  { %v1709_v46 = vmul.f32 0.05, %v1705_v25  ;;  %v3838_v53 = vpop.f32.mrb[19].mxu1 }
0x11c7   :  { %v5916_v61 = vsub.f32 %v5836_v2, %v1709_v46 }
0x11c9   :  { %1777 = vmatprep.mubr.f32.mxu0 %v5916_v61 }
0x11ca   :  { %1778 = vmatmul.mubr.f32.vlgmr.msra.gmra.mrb[20].mxu0 %v5020_v26 }
0x11cb   :  { %4732 = vmatpush3.bf16.msra.mxu0 %v5473_v24  ;;  %3906 = vmatprep.mubr.msk.f32.mxu0 %vm5229_vm0, %v5230_v17 }
0x11cc   :  { %4733 = vmatprep.subr.bf16.mxu0 %v5228_v0 }
0x11cf   :  { %4735 = vmatpush3.bf16.msra.mxu0 %v5476_v27 }
0x11d0   :  { %4736 = vmatprep.subr.bf16.mxu0 %v5228_v0 }
0x11d3   :  { %4738 = vmatpush3.bf16.msra.mxu0 %v5480_v32 }
0x11d4   :  { %4739 = vmatprep.subr.bf16.mxu0 %v5228_v0 }
0x11d7   :  { %4741 = vmatpush3.bf16.msra.mxu0 %v5484_v36 }
0x11d8   :  { %4742 = vmatprep.subr.bf16.mxu0 %v5228_v0 }
0x11db   :  { %4744 = vmatpush3.bf16.msra.mxu0 %v5488_v40 }
0x11dc   :  { %4745 = vmatprep.subr.bf16.mxu0 %v5228_v0 }
0x11df   :  { %4747 = vmatpush3.bf16.msra.mxu0 %v5492_v45 }
0x11e0   :  { %4748 = vmatprep.subr.bf16.mxu0 %v5228_v0 }
0x11e3   :  { %4750 = vmatpush3.bf16.msra.mxu0 %v5496_v52 }
0x11e4   :  { %4751 = vmatprep.subr.bf16.mxu0 %v5228_v0 }
0x11e7   :  { %4753 = vmatpush3.bf16.msra.mxu0 %v5516_v10 }
0x11e8   :  { %4779 = vmatprep.subr.bf16.mxu0 %v5382_v4 }
0x129d   :  { %v3088_v2 = vpop.f32.mrb[20].mxu0 }
0x129e   :  { %v3089_v1 = vpop.f32.mrb[21].mxu0 }
0x129f   :  { %v3090_v62 = vadd.f32 %v3089_v1, %v3088_v2 }
0x12a1   :  { %v1780_v54 = vadd.f32 %v5940_v5, %v3090_v62 }
0x12a3   :  { %v1783_v57 = vmul.f32 0.5, %v1780_v54 }
0x12a5   :  { %v5943_v11 = vadd.f32 %v1783_v57, %v1712_v48 }
0x12a7   :  { %5021 = vtanh.f32 %v5943_v11 }
0x12b1   :  { %v5022_v13 = vpop.eup %5021 }
0x12b2   :  { %3872 = vmatmul.mubr.f32.vlgmr.msra.gmra.mrb[20].mxu1 %v5022_v13 }
0x12b3   :  { %4756 = vmatpush3.bf16.msra.mxu1 %v5520_v16  ;;  %3941 = vmatprep.mubr.msk.f32.mxu1 %vm5229_vm0, %v5230_v17 }
0x12b4   :  { %4757 = vmatprep.subr.bf16.mxu1 %v5228_v0 }
0x12b7   :  { %4759 = vmatpush3.bf16.msra.mxu1 %v5523_v22 }
0x12b8   :  { %4760 = vmatprep.subr.bf16.mxu1 %v5228_v0 }
0x12bb   :  { %4762 = vmatpush3.bf16.msra.mxu1 %v5527_v28 }
0x12bc   :  { %4763 = vmatprep.subr.bf16.mxu1 %v5228_v0 }
0x12bf   :  { %4765 = vmatpush3.bf16.msra.mxu1 %v5531_v35 }
0x12c0   :  { %4766 = vmatprep.subr.bf16.mxu1 %v5228_v0 }
0x12c3   :  { %4768 = vmatpush3.bf16.msra.mxu1 %v5535_v43 }
0x12c4   :  { %4769 = vmatprep.subr.bf16.mxu1 %v5228_v0 }
0x12c7   :  { %4771 = vmatpush3.bf16.msra.mxu1 %v5539_v51 }
0x12c8   :  { %4772 = vmatprep.subr.bf16.mxu1 %v5228_v0 }
0x12cb   :  { %4774 = vmatpush3.bf16.msra.mxu1 %v5543_v58 }
0x12cc   :  { %4775 = vmatprep.subr.bf16.mxu1 %v5228_v0 }
0x12cf   :  { %4777 = vmatpush3.bf16.msra.mxu1 %v5570_v19 }
0x12d0   :  { %4810 = vmatprep.subr.bf16.mxu1 %v5228_v0 }
0x1385   :  { %v1852_v23 = vpop.f32.mrb[20].mxu1 }
0x1386   :  { %v1853_v6 = vadd.f32 %v5551_v60, %v1852_v23  ;;  %v3873_v34 = vpop.f32.mrb[21].mxu1  ;;  %v1861_v60 = vmul.f32 %v5022_v13, %v5022_v13 }
0x1388   :  { %v1858_v37 = vsub.f32 %v1853_v6, %v1857_v31  ;;  %v1862_v39 = vsub.f32 1.0, %v1861_v60  ;;  %v6047_v60 = vld [vmem:[%s6145_s8] ss:$0 sm:$0xff]  ;;  %s5231_s8 = smov [#allocation16]  }
0x1389   :  { %s2609_s1 = sshll.u32 %s5231_s8, 4  ;;  %s2610_s1 = int_to_ptr.vmem [resolvable:$true] %s2609_s1 }
0x138a   :  { %1860 = vst [vmem:[#allocation16 + $0x28] sm:$0xff] %v1858_v37  ;;  %3907 = vmatmul.mubr.f32.vlgmr.msra.gmra.mrb[22].mxu0 %v1858_v37  ;;  %v1863_v44 = vmul.f32 0.1, %v1862_v39  ;;  %v2154_v37 = vld [vmem:[#allocation4 + $0x30] sm:$0xff]  ;;  %s5187_s13 = scalar_lea.vmem %s2610_s1, 1024  ;;  %p5192_p1 = scmp.lt.s32.totalorder %s2610_s1, %s2610_s1 }
0x138b   :  { %4781 = vmatpush3.bf16.msra.mxu0 %v5384_v8  ;;  %p5188_p0 = scmp.ne.s32.totalorder %s2610_s1, %s5187_s13  ;;  %p5193_p2 = scmp.lt.s32.totalorder %s5187_s13, %s5187_s13 }
0x138c   :  { %4783 = vmatprep.subr.bf16.mxu0 %v5386_v9 }
0x138d   :  { %p5194_p3 = por %p5193_p2, %p5192_p1 }
0x138f   :  { %4785 = vmatpush3.bf16.msra.mxu0 %v5390_v14  ;;  %p5195_p4 = pnand %p5194_p3, %p5188_p0 }
0x1390   :  { %4787 = vmatprep.subr.bf16.mxu0 %v5393_v15 }
0x1393   :  { %4789 = vmatpush3.bf16.msra.mxu0 %v5396_v20 }
0x1394   :  { %4791 = vmatprep.subr.bf16.mxu0 %v5399_v21 }
0x1397   :  { %4793 = vmatpush3.bf16.msra.mxu0 %v5405_v29 }
0x1398   :  { %4795 = vmatprep.subr.bf16.mxu0 %v5410_v33 }
0x139b   :  { %4797 = vmatpush3.bf16.msra.mxu0 %v5417_v41 }
0x139c   :  { %4799 = vmatprep.subr.bf16.mxu0 %v5420_v42 }
0x139f   :  { %4801 = vmatpush3.bf16.msra.mxu0 %v5429_v49 }
0x13a0   :  { %4803 = vmatprep.subr.bf16.mxu0 %v5432_v50 }
0x13a3   :  { %4805 = vmatpush3.bf16.msra.mxu0 %v5438_v55 }
0x13a4   :  { %4807 = vmatprep.subr.bf16.mxu0 %v5441_v56 }
0x13a7   :  { %4809 = vmatpush3.bf16.msra.mxu0 %v5444_v59 }
0x13a8   :  { %4834 = vmatprep.subr.bf16.mxu0 %v5228_v0 }
0x145d   :  { %v1930_v25 = vpop.f32.mrb[22].mxu0 }
0x145e   :  { %v1934_v46 = vmul.f32 %v1930_v25, %v1863_v44  ;;  %v3908_v53 = vpop.f32.mrb[23].mxu0 }
0x1460   :  { %3942 = vmatmul.mubr.f32.vlgmr.msra.gmra.mrb[22].mxu1 %v1934_v46  ;;  %v1935_v26 = vsub.f32 %v5943_v11, %v1934_v46 }
0x1461   :  { %4812 = vmatpush3.bf16.msra.mxu1 %v5407_v30  ;;  %3976 = vmatprep.mubr.msk.f32.mxu1 %vm5229_vm0, %v5230_v17 }
0x1462   :  { %4813 = vmatprep.subr.bf16.mxu1 %v5228_v0  ;;  %5023 = vtanh.f32 %v1935_v26  ;;  %v2009_v23 = vmul.f32 0.5, %v1935_v26 }
0x1465   :  { %4815 = vmatpush3.bf16.msra.mxu1 %v5413_v38 }
0x1466   :  { %4816 = vmatprep.subr.bf16.mxu1 %v5228_v0 }
0x1469   :  { %4818 = vmatpush3.bf16.msra.mxu1 %v5423_v47 }
0x146a   :  { %4819 = vmatprep.subr.bf16.mxu1 %v5228_v0 }
0x146c   :  { %v5024_v48 = vpop.eup %5023 }
0x146d   :  { %4821 = vmatpush3.bf16.msra.mxu1 %v5449_v63 }
0x146e   :  { %4822 = vmatprep.subr.bf16.mxu1 %v5228_v0 }
0x1471   :  { %4824 = vmatpush3.bf16.msra.mxu1 %v5453_v3 }
0x1472   :  { %4825 = vmatprep.subr.bf16.mxu1 %v5228_v0 }
0x1475   :  { %4827 = vmatpush3.bf16.msra.mxu1 %v5457_v7 }
0x1476   :  { %4828 = vmatprep.subr.bf16.mxu1 %v5228_v0 }
0x1479   :  { %4830 = vmatpush3.bf16.msra.mxu1 %v5461_v12 }
0x147a   :  { %4831 = vmatprep.subr.bf16.mxu1 %v5228_v0 }
0x147d   :  { %4833 = vmatpush3.bf16.msra.mxu1 %v5468_v18 }
0x147e   :  { %4858 = vmatprep.subr.bf16.mxu1 %v5228_v0 }
0x1533   :  { %v2002_v2 = vpop.f32.mrb[22].mxu1 }
0x1534   :  { %v2006_v1 = vmul.f32 0.05, %v2002_v2  ;;  %v3943_v62 = vpop.f32.mrb[23].mxu1 }
0x1536   :  { %v6001_v54 = vsub.f32 %v5916_v61, %v2006_v1 }
0x1538   :  { %2074 = vmatprep.mubr.f32.mxu0 %v6001_v54 }
0x1539   :  { %2075 = vmatmul.mubr.f32.vlgmr.msra.gmra.mrb[24].mxu0 %v5024_v48 }
0x153a   :  { %4836 = vmatpush3.bf16.msra.mxu0 %v5473_v24  ;;  %4011 = vmatprep.mubr.msk.f32.mxu0 %vm5229_vm0, %v5230_v17 }
0x153b   :  { %4837 = vmatprep.subr.bf16.mxu0 %v5228_v0 }
0x153e   :  { %4839 = vmatpush3.bf16.msra.mxu0 %v5476_v27 }
0x153f   :  { %4840 = vmatprep.subr.bf16.mxu0 %v5228_v0 }
0x1542   :  { %4842 = vmatpush3.bf16.msra.mxu0 %v5480_v32 }
0x1543   :  { %4843 = vmatprep.subr.bf16.mxu0 %v5228_v0 }
0x1546   :  { %4845 = vmatpush3.bf16.msra.mxu0 %v5484_v36 }
0x1547   :  { %4846 = vmatprep.subr.bf16.mxu0 %v5228_v0 }
0x154a   :  { %4848 = vmatpush3.bf16.msra.mxu0 %v5488_v40 }
0x154b   :  { %4849 = vmatprep.subr.bf16.mxu0 %v5228_v0 }
0x154e   :  { %4851 = vmatpush3.bf16.msra.mxu0 %v5492_v45 }
0x154f   :  { %4852 = vmatprep.subr.bf16.mxu0 %v5228_v0 }
0x1552   :  { %4854 = vmatpush3.bf16.msra.mxu0 %v5496_v52 }
0x1553   :  { %4855 = vmatprep.subr.bf16.mxu0 %v5228_v0 }
0x1556   :  { %4857 = vmatpush3.bf16.msra.mxu0 %v5516_v10 }
0x1557   :  { %4883 = vmatprep.subr.bf16.mxu0 %v5382_v4 }
0x160c   :  { %v3174_v61 = vpop.f32.mrb[24].mxu0 }
0x160d   :  { %v3175_v57 = vpop.f32.mrb[25].mxu0 }
0x160e   :  { %v3176_v11 = vadd.f32 %v3175_v57, %v3174_v61 }
0x1610   :  { %v2077_v13 = vadd.f32 %v5940_v5, %v3176_v11 }
0x1612   :  { %v2080_v31 = vmul.f32 0.5, %v2077_v13 }
0x1614   :  { %v6023_v6 = vadd.f32 %v2080_v31, %v2009_v23 }
0x1616   :  { %5025 = vtanh.f32 %v6023_v6 }
0x1620   :  { %v5026_v34 = vpop.eup %5025 }
0x1621   :  { %3977 = vmatmul.mubr.f32.vlgmr.msra.gmra.mrb[24].mxu1 %v5026_v34 }
0x1622   :  { %4860 = vmatpush3.bf16.msra.mxu1 %v5520_v16  ;;  %4046 = vmatprep.mubr.msk.f32.mxu1 %vm5229_vm0, %v5230_v17 }
0x1623   :  { %4861 = vmatprep.subr.bf16.mxu1 %v5228_v0 }
0x1626   :  { %4863 = vmatpush3.bf16.msra.mxu1 %v5523_v22 }
0x1627   :  { %4864 = vmatprep.subr.bf16.mxu1 %v5228_v0 }
0x162a   :  { %4866 = vmatpush3.bf16.msra.mxu1 %v5527_v28 }
0x162b   :  { %4867 = vmatprep.subr.bf16.mxu1 %v5228_v0 }
0x162e   :  { %4869 = vmatpush3.bf16.msra.mxu1 %v5531_v35 }
0x162f   :  { %4870 = vmatprep.subr.bf16.mxu1 %v5228_v0 }
0x1632   :  { %4872 = vmatpush3.bf16.msra.mxu1 %v5535_v43 }
0x1633   :  { %4873 = vmatprep.subr.bf16.mxu1 %v5228_v0 }
0x1636   :  { %4875 = vmatpush3.bf16.msra.mxu1 %v5539_v51 }
0x1637   :  { %4876 = vmatprep.subr.bf16.mxu1 %v5228_v0 }
0x163a   :  { %4878 = vmatpush3.bf16.msra.mxu1 %v5543_v58 }
0x163b   :  { %4879 = vmatprep.subr.bf16.mxu1 %v5228_v0 }
0x163e   :  { %4881 = vmatpush3.bf16.msra.mxu1 %v5570_v19 }
0x163f   :  { %4914 = vmatprep.subr.bf16.mxu1 %v5228_v0 }
0x16f4   :  { %v2149_v4 = vpop.f32.mrb[24].mxu1 }
0x16f5   :  { %v2150_v39 = vadd.f32 %v6047_v60, %v2149_v4  ;;  %v3978_v44 = vpop.f32.mrb[25].mxu1 }
0x16f7   :  { %v2155_v25 = vsub.f32 %v2150_v39, %v2154_v37 }
0x16f9   :  { %2157 = vst [vmem:[#allocation16 + $0x30] sm:$0xff] %v2155_v25  ;;  %4012 = vmatmul.mubr.f32.vlgmr.msra.gmra.mrb[26].mxu0 %v2155_v25 }
0x16fa   :  { %4885 = vmatpush3.bf16.msra.mxu0 %v5384_v8  ;;  %v2158_v8 = vmul.f32 %v5026_v34, %v5026_v34 }
0x16fb   :  { %4887 = vmatprep.subr.bf16.mxu0 %v5386_v9 }
0x16fc   :  { %v2159_v9 = vsub.f32 1.0, %v2158_v8 }
0x16fe   :  { %4889 = vmatpush3.bf16.msra.mxu0 %v5390_v14  ;;  %v2160_v14 = vmul.f32 0.1, %v2159_v9 }
0x16ff   :  { %4891 = vmatprep.subr.bf16.mxu0 %v5393_v15 }
0x1702   :  { %4893 = vmatpush3.bf16.msra.mxu0 %v5396_v20 }
0x1703   :  { %4895 = vmatprep.subr.bf16.mxu0 %v5399_v21 }
0x1706   :  { %4897 = vmatpush3.bf16.msra.mxu0 %v5405_v29 }
0x1707   :  { %4899 = vmatprep.subr.bf16.mxu0 %v5410_v33 }
0x170a   :  { %4901 = vmatpush3.bf16.msra.mxu0 %v5417_v41 }
0x170b   :  { %4903 = vmatprep.subr.bf16.mxu0 %v5420_v42 }
0x170e   :  { %4905 = vmatpush3.bf16.msra.mxu0 %v5429_v49 }
0x170f   :  { %4907 = vmatprep.subr.bf16.mxu0 %v5432_v50 }
0x1712   :  { %4909 = vmatpush3.bf16.msra.mxu0 %v5438_v55 }
0x1713   :  { %4911 = vmatprep.subr.bf16.mxu0 %v5441_v56 }
0x1716   :  { %4913 = vmatpush3.bf16.msra.mxu0 %v5444_v59 }
0x1717   :  { %4938 = vmatprep.subr.bf16.mxu0 %v5228_v0 }
0x17cc   :  { %v2227_v15 = vpop.f32.mrb[26].mxu0 }
0x17cd   :  { %v2231_v20 = vmul.f32 %v2227_v15, %v2160_v14  ;;  %v4013_v21 = vpop.f32.mrb[27].mxu0 }
0x17cf   :  { %4047 = vmatmul.mubr.f32.vlgmr.msra.gmra.mrb[26].mxu1 %v2231_v20  ;;  %v2232_v29 = vsub.f32 %v6023_v6, %v2231_v20 }
0x17d0   :  { %4916 = vmatpush3.bf16.msra.mxu1 %v5407_v30  ;;  %4081 = vmatprep.mubr.msk.f32.mxu1 %vm5229_vm0, %v5230_v17 }
0x17d1   :  { %4917 = vmatprep.subr.bf16.mxu1 %v5228_v0  ;;  %5027 = vtanh.f32 %v2232_v29  ;;  %v2306_v56 = vmul.f32 0.5, %v2232_v29 }
0x17d4   :  { %4919 = vmatpush3.bf16.msra.mxu1 %v5413_v38 }
0x17d5   :  { %4920 = vmatprep.subr.bf16.mxu1 %v5228_v0 }
0x17d8   :  { %4922 = vmatpush3.bf16.msra.mxu1 %v5423_v47 }
0x17d9   :  { %4923 = vmatprep.subr.bf16.mxu1 %v5228_v0 }
0x17db   :  { %v5028_v42 = vpop.eup %5027 }
0x17dc   :  { %4925 = vmatpush3.bf16.msra.mxu1 %v5449_v63 }
0x17dd   :  { %4926 = vmatprep.subr.bf16.mxu1 %v5228_v0 }
0x17e0   :  { %4928 = vmatpush3.bf16.msra.mxu1 %v5453_v3 }
0x17e1   :  { %4929 = vmatprep.subr.bf16.mxu1 %v5228_v0 }
0x17e4   :  { %4931 = vmatpush3.bf16.msra.mxu1 %v5457_v7 }
0x17e5   :  { %4932 = vmatprep.subr.bf16.mxu1 %v5228_v0 }
0x17e8   :  { %4934 = vmatpush3.bf16.msra.mxu1 %v5461_v12  ;;  %v2451_v12 = vld [vmem:[#allocation4 + $0x38] sm:$0xff] }
0x17e9   :  { %4935 = vmatprep.subr.bf16.mxu1 %v5228_v0 }
0x17ec   :  { %4937 = vmatpush3.bf16.msra.mxu1 %v5468_v18 }
0x17ed   :  { %4962 = vmatprep.subr.bf16.mxu1 %v5228_v0 }
0x18a2   :  { %v2299_v30 = vpop.f32.mrb[26].mxu1 }
0x18a3   :  { %v2303_v33 = vmul.f32 0.05, %v2299_v30  ;;  %v4048_v38 = vpop.f32.mrb[27].mxu1 }
0x18a5   :  { %v2304_v41 = vsub.f32 %v6001_v54, %v2303_v33 }
0x18a7   :  { %2371 = vmatprep.mubr.f32.mxu0 %v2304_v41 }
0x18a8   :  { %2372 = vmatmul.mubr.f32.vlgmr.msra.gmra.mrb[28].mxu0 %v5028_v42 }
0x18a9   :  { %4940 = vmatpush3.bf16.msra.mxu0 %v5473_v24  ;;  %4116 = vmatprep.mubr.msk.f32.mxu0 %vm5229_vm0, %v5230_v17 }
0x18aa   :  { %4941 = vmatprep.subr.bf16.mxu0 %v5228_v0 }
0x18ad   :  { %4943 = vmatpush3.bf16.msra.mxu0 %v5476_v27 }
0x18ae   :  { %4944 = vmatprep.subr.bf16.mxu0 %v5228_v0 }
0x18b1   :  { %4946 = vmatpush3.bf16.msra.mxu0 %v5480_v32 }
0x18b2   :  { %4947 = vmatprep.subr.bf16.mxu0 %v5228_v0 }
0x18b5   :  { %4949 = vmatpush3.bf16.msra.mxu0 %v5484_v36 }
0x18b6   :  { %4950 = vmatprep.subr.bf16.mxu0 %v5228_v0 }
0x18b9   :  { %4952 = vmatpush3.bf16.msra.mxu0 %v5488_v40 }
0x18ba   :  { %4953 = vmatprep.subr.bf16.mxu0 %v5228_v0 }
0x18bd   :  { %4955 = vmatpush3.bf16.msra.mxu0 %v5492_v45 }
0x18be   :  { %4956 = vmatprep.subr.bf16.mxu0 %v5228_v0 }
0x18c1   :  { %4958 = vmatpush3.bf16.msra.mxu0 %v5496_v52 }
0x18c2   :  { %4959 = vmatprep.subr.bf16.mxu0 %v5228_v0 }
0x18c5   :  { %4961 = vmatpush3.bf16.msra.mxu0 %v5516_v10 }
0x197b   :  { %v3260_v47 = vpop.f32.mrb[28].mxu0 }
0x197c   :  { %v3261_v49 = vpop.f32.mrb[29].mxu0 }
0x197d   :  { %v3262_v50 = vadd.f32 %v3261_v49, %v3260_v47 }
0x197f   :  { %v2374_v55 = vadd.f32 %v5940_v5, %v3262_v50 }
0x1981   :  { %v2377_v59 = vmul.f32 0.5, %v2374_v55 }
0x1983   :  { %v2378_v63 = vadd.f32 %v2377_v59, %v2306_v56 }
0x1985   :  { %5029 = vtanh.f32 %v2378_v63 }
0x198f   :  { %v5030_v3 = vpop.eup %5029 }
0x1990   :  { %4082 = vmatmul.mubr.f32.vlgmr.msra.gmra.mrb[28].mxu1 %v5030_v3  ;;  %v2455_v27 = vmul.f32 %v5030_v3, %v5030_v3 }
0x1991   :  { %4964 = vmatpush3.bf16.msra.mxu1 %v5520_v16  ;;  %4151 = vmatprep.mubr.msk.f32.mxu1 %vm5229_vm0, %v5230_v17 }
0x1992   :  { %4965 = vmatprep.subr.bf16.mxu1 %v5228_v0  ;;  %v2456_v32 = vsub.f32 1.0, %v2455_v27 }
0x1994   :  { %v2457_v36 = vmul.f32 0.1, %v2456_v32 }
0x1995   :  { %4967 = vmatpush3.bf16.msra.mxu1 %v5523_v22 }
0x1996   :  { %4968 = vmatprep.subr.bf16.mxu1 %v5228_v0 }
0x1999   :  { %4970 = vmatpush3.bf16.msra.mxu1 %v5527_v28 }
0x199a   :  { %4971 = vmatprep.subr.bf16.mxu1 %v5228_v0 }
0x199d   :  { %4973 = vmatpush3.bf16.msra.mxu1 %v5531_v35 }
0x199e   :  { %4974 = vmatprep.subr.bf16.mxu1 %v5228_v0 }
0x19a1   :  { %4976 = vmatpush3.bf16.msra.mxu1 %v5535_v43 }
0x19a2   :  { %4977 = vmatprep.subr.bf16.mxu1 %v5228_v0 }
0x19a5   :  { %4979 = vmatpush3.bf16.msra.mxu1 %v5539_v51 }
0x19a6   :  { %4980 = vmatprep.subr.bf16.mxu1 %v5228_v0 }
0x19a9   :  { %4982 = vmatpush3.bf16.msra.mxu1 %v5543_v58 }
0x19aa   :  { %4983 = vmatprep.subr.bf16.mxu1 %v5228_v0 }
0x19ad   :  { %4985 = vmatpush3.bf16.msra.mxu1 %v5570_v19 }
0x1a63   :  { %v2446_v7 = vpop.f32.mrb[28].mxu1 }
0x1a64   :  { %v2447_v17 = vadd.f32 %v6047_v60, %v2446_v7  ;;  %v4083_v18 = vpop.f32.mrb[29].mxu1 }
0x1a66   :  { %v2452_v24 = vsub.f32 %v2447_v17, %v2451_v12 }
0x1a68   :  { %2454 = vst [vmem:[#allocation16 + $0x38] sm:$0xff] %v2452_v24  ;;  %4117 = vmatmul.mubr.f32.vlgmr.msra.gmra.mrb[30].mxu0 %v2452_v24 }
0x1b3b   :  { %v2524_v40 = vpop.f32.mrb[30].mxu0 }
0x1b3c   :  { %v2528_v45 = vmul.f32 %v2524_v40, %v2457_v36  ;;  %v4118_v52 = vpop.f32.mrb[31].mxu0 }
0x1b3e   :  { %4152 = vmatmul.mubr.f32.vlgmr.msra.gmra.mrb[30].mxu1 %v2528_v45 }
0x1b3f   :  { %5198 = shalt.err (!%p5195_p4)
}
0x1b40   :  { %s5199_s5 = scalar_lea.hbm %s6146_s9, 1024 }
0x1b41   :  { %p5200_p5 = scmp.ne.s32.totalorder %s6146_s9, %s5199_s5  ;;  %p5203_p6 = scmp.lt.u32.totalorder %s5199_s5, %s6146_s9 }
0x1b43   :  { %p5205_p7 = pnand %p5203_p6, %p5200_p5 }
0x1b45   :  { %5208 = shalt.err (!%p5205_p7)
}
0x1b46   :  { %2615 = dma.vmem_to_hbm [thread:$0]  %s2610_s1, 1024, %s6146_s9, [#allocation6], %s5222_s10, %s5222_s10, %s5223_s12  }
0x1c11   :  { %v2596_v0 = vpop.f32.mrb[30].mxu1 }
0x1c12   :  { %v4153_v10 = vpop.f32.mrb[31].mxu1 }
0x1c13   :  { %5217 = dma.done.wait [#allocation6], 1024  }
0x1c14   :  { %5218 = vsyncadd [#allocation6], 4294966272 }
0x1c15   :  { %2619 = vsyncpa [#allocation5], 1 }
0x1c16   :  { %2620 = vsyncpa [#allocation8], 1 }
0x1c17   :  { %2621 = vsyncpa [#allocation11], 1 }
0x1c18   :  { %2622 = vsyncpa [#allocation14], 1 }
0x1c19   :  { %2623 = vsyncpa [#allocation6], 1 }

</bundles_post_ra>
